<compile_context>
chip_gen: v7x
topology: tpu7x:2x2x1
jax: 0.10.0
libtpu: 0.0.40
codegen_flags: <defaults>
</compile_context>

<pallas_src>
import jax
import jax.numpy as jnp
import numpy as np
from jax.experimental import pallas as pl
from jax.experimental.pallas import tpu as pltpu


# Fixed by the PyTorch module spec: Conv2d(1,32,3), Conv2d(32,64,3),
# MaxPool2d(2,2), Linear(flat,128), Linear(128,3).
KH = KW = 3
C1 = 32
C2 = 64
FC2_OUT = 3


# ----------------------------------------------------------------------------
# Fused forward kernel (built per static (N, H, W) via closure).
# Layout convention inside the kernel: activations are 2-D, rows = (image, h)
# and lanes = (w, channel) with channel minor.  Conv k-th kernel-row partial
# sums come from one matmul against the banded matrix A[kh]/B[kh]; the kh sum
# is a shifted row add.  Pooling/flatten are static slices + max + concat.
# ----------------------------------------------------------------------------
def _make_fused_kernel(N, H, W):
    H1, W1 = H - KH + 1, W - KW + 1          # conv1 output (14, 14)
    H1p, W1p = H1 // 2, W1 // 2              # after 2x2 pool (7, 7)
    H2, W2 = H1p - KH + 1, W1p - KW + 1      # conv2 output (5, 5)
    H2p, W2p = H2 // 2, W2 // 2              # after 2x2 pool (2, 2)

    def kernel(x_ref, a_ref, b1_ref, bb_ref, b2_ref,
               fc1w_ref, fc1b_ref, fc2w_ref, fc2b_ref, o_ref):
        # ---------------- conv1: 3 batched matmuls over the whole batch ----
        x = x_ref[...]                                        # (N*H, W)
        t1 = [jnp.dot(x, a_ref[kh], preferred_element_type=jnp.float32)
              for kh in range(KH)]                            # each (N*H, W1*C1)
        b1 = b1_ref[...]                                      # (1, W1*C1)
        b2 = b2_ref[...]                                      # (1, W2*C2)

        pooled1 = []
        for n in range(N):
            r = n * H
            y = t1[0][r:r + H1, :]
            for kh in range(1, KH):
                y = y + t1[kh][r + kh:r + kh + H1, :]         # shifted kh sum
            y = jnp.maximum(y + b1, 0.0)                      # bias + ReLU
            # 2x2/2 max pool: H (row pairs), then W (32-lane channel blocks)
            hrows = [jnp.maximum(y[2 * p:2 * p + 1, :], y[2 * p + 1:2 * p + 2, :])
                     for p in range(H1p)]
            yh = jnp.concatenate(hrows, axis=0)               # (H1p, W1*C1)
            wblk = [jnp.maximum(yh[:, (2 * p) * C1:(2 * p + 1) * C1],
                                yh[:, (2 * p + 1) * C1:(2 * p + 2) * C1])
                    for p in range(W1p)]
            pooled1.append(jnp.concatenate(wblk, axis=1))     # (H1p, W1p*C1)
        p1 = jnp.concatenate(pooled1, axis=0)                 # (N*H1p, W1p*C1)

        # ---------------- conv2: 3 batched matmuls --------------------------
        t2 = [jnp.dot(p1, bb_ref[kh], preferred_element_type=jnp.float32)
              for kh in range(KH)]                            # each (N*H1p, W2*C2)

        feats = []
        for n in range(N):
            r = n * H1p
            y = t2[0][r:r + H2, :]
            for kh in range(1, KH):
                y = y + t2[kh][r + kh:r + kh + H2, :]
            y = jnp.maximum(y + b2, 0.0)                      # (H2, W2*C2)
            # 2x2/2 max pool (floor mode drops the odd tail) + NHWC flatten:
            hrows = [jnp.maximum(y[2 * p:2 * p + 1, :], y[2 * p + 1:2 * p + 2, :])
                     for p in range(H2p)]
            hw = []
            for ph in range(H2p):
                for pw in range(W2p):
                    hw.append(jnp.maximum(
                        hrows[ph][:, (2 * pw) * C2:(2 * pw + 1) * C2],
                        hrows[ph][:, (2 * pw + 1) * C2:(2 * pw + 2) * C2]))
            feats.append(jnp.concatenate(hw, axis=1))         # (1, H2p*W2p*C2)
        xf = jnp.concatenate(feats, axis=0)                   # (N, flat) NHWC

        # ---------------- fc1 + ReLU, fc2 + ReLU ----------------------------
        h1 = jnp.maximum(
            jnp.dot(xf, fc1w_ref[...], preferred_element_type=jnp.float32)
            + fc1b_ref[...], 0.0)
        out = jnp.maximum(
            jnp.dot(h1, fc2w_ref[...], preferred_element_type=jnp.float32)
            + fc2b_ref[...], 0.0)
        o_ref[...] = out.astype(o_ref.dtype)

    dims = (H1, W1, H1p, W1p, H2, W2, H2p, W2p)
    return kernel, dims


def net_forward(x_nchw, kp):
    """x_nchw: (N, 1, H, W) f32; kp: prepared kernel params (see prepare_params)."""
    N, Cin, H, W = x_nchw.shape
    assert Cin == 1
    kernel, dims = _make_fused_kernel(N, H, W)
    H1, W1, H1p, W1p, H2, W2, H2p, W2p = dims
    assert kp["fc1_w"].shape[0] == H2p * W2p * C2

    # Free metadata reshape: (N,1,H,W) is contiguous -> (N*H, W).
    x2d = x_nchw.reshape(N * H, W)

    def fullspec(shape):
        return pl.BlockSpec(shape, lambda i, _s=shape: (0,) * len(_s))

    return pl.pallas_call(
        kernel,
        out_shape=jax.ShapeDtypeStruct((N, FC2_OUT), x_nchw.dtype),
        grid=(1,),
        in_specs=[
            fullspec(x2d.shape),
            fullspec(kp["A"].shape),
            fullspec(kp["b1t"].shape),
            fullspec(kp["B"].shape),
            fullspec(kp["b2t"].shape),
            fullspec(kp["fc1_w"].shape),
            fullspec(kp["fc1_b"].shape),
            fullspec(kp["fc2_w"].shape),
            fullspec(kp["fc2_b"].shape),
        ],
        out_specs=fullspec((N, FC2_OUT)),
        compiler_params=pltpu.CompilerParams(
            dimension_semantics=("arbitrary",)),
    )(x2d, kp["A"], kp["b1t"], kp["B"], kp["b2t"],
      kp["fc1_w"], kp["fc1_b"], kp["fc2_w"], kp["fc2_b"])


# ----------------------------------------------------------------------------
# One-time host-side weight repacking (done once at init, free at runtime).
# ----------------------------------------------------------------------------
def prepare_params(p, H=16, W=16):
    w1 = np.asarray(p["w1"], np.float32)   # (KH, KW, 1, C1) HWIO
    w2 = np.asarray(p["w2"], np.float32)   # (KH, KW, C1, C2)
    b1 = np.asarray(p["b1"], np.float32)
    b2 = np.asarray(p["b2"], np.float32)
    kh_, kw_, _, c1 = w1.shape
    c2 = w2.shape[3]
    H1, W1 = H - kh_ + 1, W - kw_ + 1
    H1p, W1p = H1 // 2, W1 // 2
    H2, W2_ = H1p - kh_ + 1, W1p - kw_ + 1
    H2p, W2p = H2 // 2, W2_ // 2

    # conv1 -> matmul: A[kh] maps an input row (W,) to the kh-partial conv
    # row flattened as (out_col j, out_channel c), c minor.
    A = np.zeros((kh_, W, W1 * c1), np.float32)
    for kh in range(kh_):
        for j in range(W1):
            for kw in range(kw_):
                A[kh, j + kw, j * c1:(j + 1) * c1] = w1[kh, kw, 0, :]

    # conv2 -> matmul: B[kh] maps a pooled row flattened as (j, ci) to the
    # kh-partial conv2 row flattened as (j2, co).
    B = np.zeros((kh_, W1p * c1, W2_ * c2), np.float32)
    for kh in range(kh_):
        for j2 in range(W2_):
            for kw in range(kw_):
                j = j2 + kw
                B[kh, j * c1:(j + 1) * c1, j2 * c2:(j2 + 1) * c2] = w2[kh, kw, :, :]

    # fc1 rows permuted from PyTorch's NCHW flatten (c,h,w) to the kernel's
    # NHWC flatten (h,w,c) so no runtime transpose is needed.
    fc1_w = np.asarray(p["fc1_w"], np.float32)              # (c2*H2p*W2p, 128)
    fc1_w_nhwc = (fc1_w.reshape(c2, H2p, W2p, -1)
                  .transpose(1, 2, 0, 3).reshape(c2 * H2p * W2p, -1))

    return {
        "A": jnp.asarray(A),
        "b1t": jnp.asarray(np.tile(b1, W1)[None, :]),
        "B": jnp.asarray(B),
        "b2t": jnp.asarray(np.tile(b2, W2_)[None, :]),
        "fc1_w": jnp.asarray(fc1_w_nhwc),
        "fc1_b": jnp.asarray(np.asarray(p["fc1_b"], np.float32)[None, :]),
        "fc2_w": jnp.asarray(np.asarray(p["fc2_w"], np.float32)),
        "fc2_b": jnp.asarray(np.asarray(p["fc2_b"], np.float32)[None, :]),
    }


# ----------------------------------------------------------------------------
# Pure-JAX reference (full f32 precision) for the numerical check.
# ----------------------------------------------------------------------------
def reference_forward(x_nchw, p):
    def conv(x, w, b):
        y = jax.lax.conv_general_dilated(
            x, w, (1, 1), "VALID",
            dimension_numbers=("NCHW", "HWIO", "NCHW"),
            precision=jax.lax.Precision.HIGHEST)
        return jax.nn.relu(y + b[None, :, None, None])

    def pool(x):
        return jax.lax.reduce_window(
            x, -jnp.inf, jax.lax.max, (1, 1, 2, 2), (1, 1, 2, 2), "VALID")

    y = pool(conv(x_nchw, p["w1"], p["b1"]))
    y = pool(conv(y, p["w2"], p["b2"]))
    y = y.reshape(y.shape[0], -1)                            # NCHW flatten
    y = jax.nn.relu(jnp.dot(y, p["fc1_w"],
                            precision=jax.lax.Precision.HIGHEST) + p["fc1_b"])
    y = jax.nn.relu(jnp.dot(y, p["fc2_w"],
                            precision=jax.lax.Precision.HIGHEST) + p["fc2_b"])
    return y


def init_params(key):
    # Deterministic synthetic weights (PyTorch-style uniform(-1/sqrt(fan_in), ..)).
    ks = jax.random.split(key, 8)

    def unif(k, shape, fan_in):
        lim = 1.0 / np.sqrt(fan_in)
        return jax.random.uniform(k, shape, jnp.float32, -lim, lim)

    # Input (N, 1, 16, 16): conv1 -> 14 -> pool 7 -> conv2 -> 5 -> pool 2.
    # PyTorch lazily sizes fc1 from the flatten; here output_size = 64*2*2.
    output_size = C2 * 2 * 2
    return {
        "w1": unif(ks[0], (3, 3, 1, C1), 1 * 3 * 3),      # HWIO
        "b1": unif(ks[1], (C1,), 1 * 3 * 3),
        "w2": unif(ks[2], (3, 3, C1, C2), C1 * 3 * 3),    # HWIO
        "b2": unif(ks[3], (C2,), C1 * 3 * 3),
        "fc1_w": unif(ks[4], (output_size, 128), output_size),  # (in, out), NCHW rows
        "fc1_b": unif(ks[5], (128,), output_size),
        "fc2_w": unif(ks[6], (128, FC2_OUT), 128),
        "fc2_b": unif(ks[7], (FC2_OUT,), 128),
    }


if __name__ == "__main__":
    key = jax.random.PRNGKey(0)
    pkey, xkey = jax.random.split(key)
    params = init_params(pkey)
    kparams = prepare_params(params, H=16, W=16)

    # PyTorch-convention NCHW input: batch=2, 1 channel, 16x16 spatial.
    x = jax.random.normal(xkey, (2, 1, 16, 16), jnp.float32)

    out = jax.jit(net_forward)(x, kparams)
    out = jax.block_until_ready(out)

    ref = jax.block_until_ready(reference_forward(x, params))
    # Kernel matmuls run at default MXU precision (bf16 inputs, f32 accum),
    # so allow a few-e-3 numeric drift vs. the full-f32 reference.
    np.testing.assert_allclose(np.asarray(out), np.asarray(ref),
                               rtol=2e-2, atol=2e-2)
    assert out.shape == (2, FC2_OUT) and out.dtype == jnp.float32

    print("KERNEL_OK")
</pallas_src>

<mosaic_0001>
module attributes {stable_mosaic.version = 11 : i64} {
  func.func @kernel(%arg0: i32, %arg1: memref<32x16xf32, #tpu.memory_space<vmem>>, %arg2: memref<3x16x448xf32, #tpu.memory_space<vmem>>, %arg3: memref<1x448xf32, #tpu.memory_space<vmem>>, %arg4: memref<3x224x320xf32, #tpu.memory_space<vmem>>, %arg5: memref<1x320xf32, #tpu.memory_space<vmem>>, %arg6: memref<256x128xf32, #tpu.memory_space<vmem>>, %arg7: memref<1x128xf32, #tpu.memory_space<vmem>>, %arg8: memref<128x3xf32, #tpu.memory_space<vmem>>, %arg9: memref<1x3xf32, #tpu.memory_space<vmem>>, %arg10: memref<2x3xf32, #tpu.memory_space<vmem>>) attributes {dimension_semantics = [#tpu.dimension_semantics<arbitrary>], iteration_bounds = array<i64: 1>, scalar_prefetch = 0 : i64, scratch_operands = 0 : i64, tpu.core_type = #tpu.core_type<tc>, window_params = [{pipeline_mode = #tpu.pipeline_mode<synchronous>, transform_indices = @transform_0, window_bounds = array<i64: 32, 16>}, {pipeline_mode = #tpu.pipeline_mode<synchronous>, transform_indices = @transform_1, window_bounds = array<i64: 3, 16, 448>}, {pipeline_mode = #tpu.pipeline_mode<synchronous>, transform_indices = @transform_2, window_bounds = array<i64: 1, 448>}, {pipeline_mode = #tpu.pipeline_mode<synchronous>, transform_indices = @transform_3, window_bounds = array<i64: 3, 224, 320>}, {pipeline_mode = #tpu.pipeline_mode<synchronous>, transform_indices = @transform_4, window_bounds = array<i64: 1, 320>}, {pipeline_mode = #tpu.pipeline_mode<synchronous>, transform_indices = @transform_5, window_bounds = array<i64: 256, 128>}, {pipeline_mode = #tpu.pipeline_mode<synchronous>, transform_indices = @transform_6, window_bounds = array<i64: 1, 128>}, {pipeline_mode = #tpu.pipeline_mode<synchronous>, transform_indices = @transform_7, window_bounds = array<i64: 128, 3>}, {pipeline_mode = #tpu.pipeline_mode<synchronous>, transform_indices = @transform_8, window_bounds = array<i64: 1, 3>}, {pipeline_mode = #tpu.pipeline_mode<synchronous>, transform_indices = @transform_9, window_bounds = array<i64: 2, 3>}]} {
    %c0 = arith.constant 0 : index
    %c0_0 = arith.constant 0 : index
    %0 = vector.load %arg1[%c0, %c0_0] : memref<32x16xf32, #tpu.memory_space<vmem>>, vector<32x16xf32>
    %c0_1 = arith.constant 0 : index
    %c0_2 = arith.constant 0 : index
    %c0_3 = arith.constant 0 : index
    %1 = vector.load %arg2[%c0_1, %c0_2, %c0_3] : memref<3x16x448xf32, #tpu.memory_space<vmem>>, vector<1x16x448xf32>
    %2 = vector.shape_cast %1 : vector<1x16x448xf32> to vector<16x448xf32>
    %cst = arith.constant dense<0.000000e+00> : vector<32x448xf32>
    %3 = tpu.matmul %0, %2, %cst {dimension_numbers = #tpu.dot_dimension_numbers<[1], [0], [0], [1], [0, 0, 1, 1], [], []>} : vector<32x16xf32>, vector<16x448xf32>, vector<32x448xf32> -> vector<32x448xf32>
    %c1 = arith.constant 1 : index
    %c0_4 = arith.constant 0 : index
    %c0_5 = arith.constant 0 : index
    %4 = vector.load %arg2[%c1, %c0_4, %c0_5] : memref<3x16x448xf32, #tpu.memory_space<vmem>>, vector<1x16x448xf32>
    %5 = vector.shape_cast %4 : vector<1x16x448xf32> to vector<16x448xf32>
    %cst_6 = arith.constant dense<0.000000e+00> : vector<32x448xf32>
    %6 = tpu.matmul %0, %5, %cst_6 {dimension_numbers = #tpu.dot_dimension_numbers<[1], [0], [0], [1], [0, 0, 1, 1], [], []>} : vector<32x16xf32>, vector<16x448xf32>, vector<32x448xf32> -> vector<32x448xf32>
    %c2 = arith.constant 2 : index
    %c0_7 = arith.constant 0 : index
    %c0_8 = arith.constant 0 : index
    %7 = vector.load %arg2[%c2, %c0_7, %c0_8] : memref<3x16x448xf32, #tpu.memory_space<vmem>>, vector<1x16x448xf32>
    %8 = vector.shape_cast %7 : vector<1x16x448xf32> to vector<16x448xf32>
    %cst_9 = arith.constant dense<0.000000e+00> : vector<32x448xf32>
    %9 = tpu.matmul %0, %8, %cst_9 {dimension_numbers = #tpu.dot_dimension_numbers<[1], [0], [0], [1], [0, 0, 1, 1], [], []>} : vector<32x16xf32>, vector<16x448xf32>, vector<32x448xf32> -> vector<32x448xf32>
    %c0_10 = arith.constant 0 : index
    %c0_11 = arith.constant 0 : index
    %10 = vector.load %arg3[%c0_10, %c0_11] : memref<1x448xf32, #tpu.memory_space<vmem>>, vector<1x448xf32>
    %c0_12 = arith.constant 0 : index
    %c0_13 = arith.constant 0 : index
    %11 = vector.load %arg5[%c0_12, %c0_13] : memref<1x320xf32, #tpu.memory_space<vmem>>, vector<1x320xf32>
    %12 = vector.extract_strided_slice %3 {offsets = [0, 0], sizes = [14, 448], strides = [1, 1]} : vector<32x448xf32> to vector<14x448xf32>
    %13 = vector.extract_strided_slice %6 {offsets = [1, 0], sizes = [14, 448], strides = [1, 1]} : vector<32x448xf32> to vector<14x448xf32>
    %14 = arith.addf %12, %13 : vector<14x448xf32>
    %15 = vector.extract_strided_slice %9 {offsets = [2, 0], sizes = [14, 448], strides = [1, 1]} : vector<32x448xf32> to vector<14x448xf32>
    %16 = arith.addf %14, %15 : vector<14x448xf32>
    %17 = vector.broadcast %10 : vector<1x448xf32> to vector<14x448xf32>
    %18 = arith.addf %16, %17 : vector<14x448xf32>
    %cst_14 = arith.constant 0.000000e+00 : f32
    %19 = vector.broadcast %cst_14 : f32 to vector<14x448xf32>
    %20 = arith.maximumf %18, %19 : vector<14x448xf32>
    %21 = vector.extract_strided_slice %20 {offsets = [0, 0], sizes = [1, 448], strides = [1, 1]} : vector<14x448xf32> to vector<1x448xf32>
    %22 = vector.extract_strided_slice %20 {offsets = [1, 0], sizes = [1, 448], strides = [1, 1]} : vector<14x448xf32> to vector<1x448xf32>
    %23 = arith.maximumf %21, %22 : vector<1x448xf32>
    %24 = vector.extract_strided_slice %20 {offsets = [2, 0], sizes = [1, 448], strides = [1, 1]} : vector<14x448xf32> to vector<1x448xf32>
    %25 = vector.extract_strided_slice %20 {offsets = [3, 0], sizes = [1, 448], strides = [1, 1]} : vector<14x448xf32> to vector<1x448xf32>
    %26 = arith.maximumf %24, %25 : vector<1x448xf32>
    %27 = vector.extract_strided_slice %20 {offsets = [4, 0], sizes = [1, 448], strides = [1, 1]} : vector<14x448xf32> to vector<1x448xf32>
    %28 = vector.extract_strided_slice %20 {offsets = [5, 0], sizes = [1, 448], strides = [1, 1]} : vector<14x448xf32> to vector<1x448xf32>
    %29 = arith.maximumf %27, %28 : vector<1x448xf32>
    %30 = vector.extract_strided_slice %20 {offsets = [6, 0], sizes = [1, 448], strides = [1, 1]} : vector<14x448xf32> to vector<1x448xf32>
    %31 = vector.extract_strided_slice %20 {offsets = [7, 0], sizes = [1, 448], strides = [1, 1]} : vector<14x448xf32> to vector<1x448xf32>
    %32 = arith.maximumf %30, %31 : vector<1x448xf32>
    %33 = vector.extract_strided_slice %20 {offsets = [8, 0], sizes = [1, 448], strides = [1, 1]} : vector<14x448xf32> to vector<1x448xf32>
    %34 = vector.extract_strided_slice %20 {offsets = [9, 0], sizes = [1, 448], strides = [1, 1]} : vector<14x448xf32> to vector<1x448xf32>
    %35 = arith.maximumf %33, %34 : vector<1x448xf32>
    %36 = vector.extract_strided_slice %20 {offsets = [10, 0], sizes = [1, 448], strides = [1, 1]} : vector<14x448xf32> to vector<1x448xf32>
    %37 = vector.extract_strided_slice %20 {offsets = [11, 0], sizes = [1, 448], strides = [1, 1]} : vector<14x448xf32> to vector<1x448xf32>
    %38 = arith.maximumf %36, %37 : vector<1x448xf32>
    %39 = vector.extract_strided_slice %20 {offsets = [12, 0], sizes = [1, 448], strides = [1, 1]} : vector<14x448xf32> to vector<1x448xf32>
    %40 = vector.extract_strided_slice %20 {offsets = [13, 0], sizes = [1, 448], strides = [1, 1]} : vector<14x448xf32> to vector<1x448xf32>
    %41 = arith.maximumf %39, %40 : vector<1x448xf32>
    %42 = tpu.concatenate %23, %26, %29, %32, %35, %38, %41 in 0 : vector<1x448xf32>, vector<1x448xf32>, vector<1x448xf32>, vector<1x448xf32>, vector<1x448xf32>, vector<1x448xf32>, vector<1x448xf32> -> vector<7x448xf32>
    %43 = vector.extract_strided_slice %42 {offsets = [0, 0], sizes = [7, 32], strides = [1, 1]} : vector<7x448xf32> to vector<7x32xf32>
    %44 = vector.extract_strided_slice %42 {offsets = [0, 32], sizes = [7, 32], strides = [1, 1]} : vector<7x448xf32> to vector<7x32xf32>
    %45 = arith.maximumf %43, %44 : vector<7x32xf32>
    %46 = vector.extract_strided_slice %42 {offsets = [0, 64], sizes = [7, 32], strides = [1, 1]} : vector<7x448xf32> to vector<7x32xf32>
    %47 = vector.extract_strided_slice %42 {offsets = [0, 96], sizes = [7, 32], strides = [1, 1]} : vector<7x448xf32> to vector<7x32xf32>
    %48 = arith.maximumf %46, %47 : vector<7x32xf32>
    %49 = vector.extract_strided_slice %42 {offsets = [0, 128], sizes = [7, 32], strides = [1, 1]} : vector<7x448xf32> to vector<7x32xf32>
    %50 = vector.extract_strided_slice %42 {offsets = [0, 160], sizes = [7, 32], strides = [1, 1]} : vector<7x448xf32> to vector<7x32xf32>
    %51 = arith.maximumf %49, %50 : vector<7x32xf32>
    %52 = vector.extract_strided_slice %42 {offsets = [0, 192], sizes = [7, 32], strides = [1, 1]} : vector<7x448xf32> to vector<7x32xf32>
    %53 = vector.extract_strided_slice %42 {offsets = [0, 224], sizes = [7, 32], strides = [1, 1]} : vector<7x448xf32> to vector<7x32xf32>
    %54 = arith.maximumf %52, %53 : vector<7x32xf32>
    %55 = vector.extract_strided_slice %42 {offsets = [0, 256], sizes = [7, 32], strides = [1, 1]} : vector<7x448xf32> to vector<7x32xf32>
    %56 = vector.extract_strided_slice %42 {offsets = [0, 288], sizes = [7, 32], strides = [1, 1]} : vector<7x448xf32> to vector<7x32xf32>
    %57 = arith.maximumf %55, %56 : vector<7x32xf32>
    %58 = vector.extract_strided_slice %42 {offsets = [0, 320], sizes = [7, 32], strides = [1, 1]} : vector<7x448xf32> to vector<7x32xf32>
    %59 = vector.extract_strided_slice %42 {offsets = [0, 352], sizes = [7, 32], strides = [1, 1]} : vector<7x448xf32> to vector<7x32xf32>
    %60 = arith.maximumf %58, %59 : vector<7x32xf32>
    %61 = vector.extract_strided_slice %42 {offsets = [0, 384], sizes = [7, 32], strides = [1, 1]} : vector<7x448xf32> to vector<7x32xf32>
    %62 = vector.extract_strided_slice %42 {offsets = [0, 416], sizes = [7, 32], strides = [1, 1]} : vector<7x448xf32> to vector<7x32xf32>
    %63 = arith.maximumf %61, %62 : vector<7x32xf32>
    %64 = tpu.concatenate %45, %48, %51, %54, %57, %60, %63 in 1 : vector<7x32xf32>, vector<7x32xf32>, vector<7x32xf32>, vector<7x32xf32>, vector<7x32xf32>, vector<7x32xf32>, vector<7x32xf32> -> vector<7x224xf32>
    %65 = vector.extract_strided_slice %3 {offsets = [16, 0], sizes = [14, 448], strides = [1, 1]} : vector<32x448xf32> to vector<14x448xf32>
    %66 = vector.extract_strided_slice %6 {offsets = [17, 0], sizes = [14, 448], strides = [1, 1]} : vector<32x448xf32> to vector<14x448xf32>
    %67 = arith.addf %65, %66 : vector<14x448xf32>
    %68 = vector.extract_strided_slice %9 {offsets = [18, 0], sizes = [14, 448], strides = [1, 1]} : vector<32x448xf32> to vector<14x448xf32>
    %69 = arith.addf %67, %68 : vector<14x448xf32>
    %70 = vector.broadcast %10 : vector<1x448xf32> to vector<14x448xf32>
    %71 = arith.addf %69, %70 : vector<14x448xf32>
    %cst_15 = arith.constant 0.000000e+00 : f32
    %72 = vector.broadcast %cst_15 : f32 to vector<14x448xf32>
    %73 = arith.maximumf %71, %72 : vector<14x448xf32>
    %74 = vector.extract_strided_slice %73 {offsets = [0, 0], sizes = [1, 448], strides = [1, 1]} : vector<14x448xf32> to vector<1x448xf32>
    %75 = vector.extract_strided_slice %73 {offsets = [1, 0], sizes = [1, 448], strides = [1, 1]} : vector<14x448xf32> to vector<1x448xf32>
    %76 = arith.maximumf %74, %75 : vector<1x448xf32>
    %77 = vector.extract_strided_slice %73 {offsets = [2, 0], sizes = [1, 448], strides = [1, 1]} : vector<14x448xf32> to vector<1x448xf32>
    %78 = vector.extract_strided_slice %73 {offsets = [3, 0], sizes = [1, 448], strides = [1, 1]} : vector<14x448xf32> to vector<1x448xf32>
    %79 = arith.maximumf %77, %78 : vector<1x448xf32>
    %80 = vector.extract_strided_slice %73 {offsets = [4, 0], sizes = [1, 448], strides = [1, 1]} : vector<14x448xf32> to vector<1x448xf32>
    %81 = vector.extract_strided_slice %73 {offsets = [5, 0], sizes = [1, 448], strides = [1, 1]} : vector<14x448xf32> to vector<1x448xf32>
    %82 = arith.maximumf %80, %81 : vector<1x448xf32>
    %83 = vector.extract_strided_slice %73 {offsets = [6, 0], sizes = [1, 448], strides = [1, 1]} : vector<14x448xf32> to vector<1x448xf32>
    %84 = vector.extract_strided_slice %73 {offsets = [7, 0], sizes = [1, 448], strides = [1, 1]} : vector<14x448xf32> to vector<1x448xf32>
    %85 = arith.maximumf %83, %84 : vector<1x448xf32>
    %86 = vector.extract_strided_slice %73 {offsets = [8, 0], sizes = [1, 448], strides = [1, 1]} : vector<14x448xf32> to vector<1x448xf32>
    %87 = vector.extract_strided_slice %73 {offsets = [9, 0], sizes = [1, 448], strides = [1, 1]} : vector<14x448xf32> to vector<1x448xf32>
    %88 = arith.maximumf %86, %87 : vector<1x448xf32>
    %89 = vector.extract_strided_slice %73 {offsets = [10, 0], sizes = [1, 448], strides = [1, 1]} : vector<14x448xf32> to vector<1x448xf32>
    %90 = vector.extract_strided_slice %73 {offsets = [11, 0], sizes = [1, 448], strides = [1, 1]} : vector<14x448xf32> to vector<1x448xf32>
    %91 = arith.maximumf %89, %90 : vector<1x448xf32>
    %92 = vector.extract_strided_slice %73 {offsets = [12, 0], sizes = [1, 448], strides = [1, 1]} : vector<14x448xf32> to vector<1x448xf32>
    %93 = vector.extract_strided_slice %73 {offsets = [13, 0], sizes = [1, 448], strides = [1, 1]} : vector<14x448xf32> to vector<1x448xf32>
    %94 = arith.maximumf %92, %93 : vector<1x448xf32>
    %95 = tpu.concatenate %76, %79, %82, %85, %88, %91, %94 in 0 : vector<1x448xf32>, vector<1x448xf32>, vector<1x448xf32>, vector<1x448xf32>, vector<1x448xf32>, vector<1x448xf32>, vector<1x448xf32> -> vector<7x448xf32>
    %96 = vector.extract_strided_slice %95 {offsets = [0, 0], sizes = [7, 32], strides = [1, 1]} : vector<7x448xf32> to vector<7x32xf32>
    %97 = vector.extract_strided_slice %95 {offsets = [0, 32], sizes = [7, 32], strides = [1, 1]} : vector<7x448xf32> to vector<7x32xf32>
    %98 = arith.maximumf %96, %97 : vector<7x32xf32>
    %99 = vector.extract_strided_slice %95 {offsets = [0, 64], sizes = [7, 32], strides = [1, 1]} : vector<7x448xf32> to vector<7x32xf32>
    %100 = vector.extract_strided_slice %95 {offsets = [0, 96], sizes = [7, 32], strides = [1, 1]} : vector<7x448xf32> to vector<7x32xf32>
    %101 = arith.maximumf %99, %100 : vector<7x32xf32>
    %102 = vector.extract_strided_slice %95 {offsets = [0, 128], sizes = [7, 32], strides = [1, 1]} : vector<7x448xf32> to vector<7x32xf32>
    %103 = vector.extract_strided_slice %95 {offsets = [0, 160], sizes = [7, 32], strides = [1, 1]} : vector<7x448xf32> to vector<7x32xf32>
    %104 = arith.maximumf %102, %103 : vector<7x32xf32>
    %105 = vector.extract_strided_slice %95 {offsets = [0, 192], sizes = [7, 32], strides = [1, 1]} : vector<7x448xf32> to vector<7x32xf32>
    %106 = vector.extract_strided_slice %95 {offsets = [0, 224], sizes = [7, 32], strides = [1, 1]} : vector<7x448xf32> to vector<7x32xf32>
    %107 = arith.maximumf %105, %106 : vector<7x32xf32>
    %108 = vector.extract_strided_slice %95 {offsets = [0, 256], sizes = [7, 32], strides = [1, 1]} : vector<7x448xf32> to vector<7x32xf32>
    %109 = vector.extract_strided_slice %95 {offsets = [0, 288], sizes = [7, 32], strides = [1, 1]} : vector<7x448xf32> to vector<7x32xf32>
    %110 = arith.maximumf %108, %109 : vector<7x32xf32>
    %111 = vector.extract_strided_slice %95 {offsets = [0, 320], sizes = [7, 32], strides = [1, 1]} : vector<7x448xf32> to vector<7x32xf32>
    %112 = vector.extract_strided_slice %95 {offsets = [0, 352], sizes = [7, 32], strides = [1, 1]} : vector<7x448xf32> to vector<7x32xf32>
    %113 = arith.maximumf %111, %112 : vector<7x32xf32>
    %114 = vector.extract_strided_slice %95 {offsets = [0, 384], sizes = [7, 32], strides = [1, 1]} : vector<7x448xf32> to vector<7x32xf32>
    %115 = vector.extract_strided_slice %95 {offsets = [0, 416], sizes = [7, 32], strides = [1, 1]} : vector<7x448xf32> to vector<7x32xf32>
    %116 = arith.maximumf %114, %115 : vector<7x32xf32>
    %117 = tpu.concatenate %98, %101, %104, %107, %110, %113, %116 in 1 : vector<7x32xf32>, vector<7x32xf32>, vector<7x32xf32>, vector<7x32xf32>, vector<7x32xf32>, vector<7x32xf32>, vector<7x32xf32> -> vector<7x224xf32>
    %118 = tpu.concatenate %64, %117 in 0 : vector<7x224xf32>, vector<7x224xf32> -> vector<14x224xf32>
    %c0_16 = arith.constant 0 : index
    %c0_17 = arith.constant 0 : index
    %c0_18 = arith.constant 0 : index
    %119 = vector.load %arg4[%c0_16, %c0_17, %c0_18] : memref<3x224x320xf32, #tpu.memory_space<vmem>>, vector<1x224x320xf32>
    %120 = vector.shape_cast %119 : vector<1x224x320xf32> to vector<224x320xf32>
    %cst_19 = arith.constant dense<0.000000e+00> : vector<14x320xf32>
    %121 = tpu.matmul %118, %120, %cst_19 {dimension_numbers = #tpu.dot_dimension_numbers<[1], [0], [0], [1], [0, 0, 1, 1], [], []>} : vector<14x224xf32>, vector<224x320xf32>, vector<14x320xf32> -> vector<14x320xf32>
    %c1_20 = arith.constant 1 : index
    %c0_21 = arith.constant 0 : index
    %c0_22 = arith.constant 0 : index
    %122 = vector.load %arg4[%c1_20, %c0_21, %c0_22] : memref<3x224x320xf32, #tpu.memory_space<vmem>>, vector<1x224x320xf32>
    %123 = vector.shape_cast %122 : vector<1x224x320xf32> to vector<224x320xf32>
    %cst_23 = arith.constant dense<0.000000e+00> : vector<14x320xf32>
    %124 = tpu.matmul %118, %123, %cst_23 {dimension_numbers = #tpu.dot_dimension_numbers<[1], [0], [0], [1], [0, 0, 1, 1], [], []>} : vector<14x224xf32>, vector<224x320xf32>, vector<14x320xf32> -> vector<14x320xf32>
    %c2_24 = arith.constant 2 : index
    %c0_25 = arith.constant 0 : index
    %c0_26 = arith.constant 0 : index
    %125 = vector.load %arg4[%c2_24, %c0_25, %c0_26] : memref<3x224x320xf32, #tpu.memory_space<vmem>>, vector<1x224x320xf32>
    %126 = vector.shape_cast %125 : vector<1x224x320xf32> to vector<224x320xf32>
    %cst_27 = arith.constant dense<0.000000e+00> : vector<14x320xf32>
    %127 = tpu.matmul %118, %126, %cst_27 {dimension_numbers = #tpu.dot_dimension_numbers<[1], [0], [0], [1], [0, 0, 1, 1], [], []>} : vector<14x224xf32>, vector<224x320xf32>, vector<14x320xf32> -> vector<14x320xf32>
    %128 = vector.extract_strided_slice %121 {offsets = [0, 0], sizes = [5, 320], strides = [1, 1]} : vector<14x320xf32> to vector<5x320xf32>
    %129 = vector.extract_strided_slice %124 {offsets = [1, 0], sizes = [5, 320], strides = [1, 1]} : vector<14x320xf32> to vector<5x320xf32>
    %130 = arith.addf %128, %129 : vector<5x320xf32>
    %131 = vector.extract_strided_slice %127 {offsets = [2, 0], sizes = [5, 320], strides = [1, 1]} : vector<14x320xf32> to vector<5x320xf32>
    %132 = arith.addf %130, %131 : vector<5x320xf32>
    %133 = vector.broadcast %11 : vector<1x320xf32> to vector<5x320xf32>
    %134 = arith.addf %132, %133 : vector<5x320xf32>
    %cst_28 = arith.constant 0.000000e+00 : f32
    %135 = vector.broadcast %cst_28 : f32 to vector<5x320xf32>
    %136 = arith.maximumf %134, %135 : vector<5x320xf32>
    %137 = vector.extract_strided_slice %136 {offsets = [0, 0], sizes = [1, 320], strides = [1, 1]} : vector<5x320xf32> to vector<1x320xf32>
    %138 = vector.extract_strided_slice %136 {offsets = [1, 0], sizes = [1, 320], strides = [1, 1]} : vector<5x320xf32> to vector<1x320xf32>
    %139 = arith.maximumf %137, %138 : vector<1x320xf32>
    %140 = vector.extract_strided_slice %136 {offsets = [2, 0], sizes = [1, 320], strides = [1, 1]} : vector<5x320xf32> to vector<1x320xf32>
    %141 = vector.extract_strided_slice %136 {offsets = [3, 0], sizes = [1, 320], strides = [1, 1]} : vector<5x320xf32> to vector<1x320xf32>
    %142 = arith.maximumf %140, %141 : vector<1x320xf32>
    %143 = vector.extract_strided_slice %139 {offsets = [0, 0], sizes = [1, 64], strides = [1, 1]} : vector<1x320xf32> to vector<1x64xf32>
    %144 = vector.extract_strided_slice %139 {offsets = [0, 64], sizes = [1, 64], strides = [1, 1]} : vector<1x320xf32> to vector<1x64xf32>
    %145 = arith.maximumf %143, %144 : vector<1x64xf32>
    %146 = vector.extract_strided_slice %139 {offsets = [0, 128], sizes = [1, 64], strides = [1, 1]} : vector<1x320xf32> to vector<1x64xf32>
    %147 = vector.extract_strided_slice %139 {offsets = [0, 192], sizes = [1, 64], strides = [1, 1]} : vector<1x320xf32> to vector<1x64xf32>
    %148 = arith.maximumf %146, %147 : vector<1x64xf32>
    %149 = vector.extract_strided_slice %142 {offsets = [0, 0], sizes = [1, 64], strides = [1, 1]} : vector<1x320xf32> to vector<1x64xf32>
    %150 = vector.extract_strided_slice %142 {offsets = [0, 64], sizes = [1, 64], strides = [1, 1]} : vector<1x320xf32> to vector<1x64xf32>
    %151 = arith.maximumf %149, %150 : vector<1x64xf32>
    %152 = vector.extract_strided_slice %142 {offsets = [0, 128], sizes = [1, 64], strides = [1, 1]} : vector<1x320xf32> to vector<1x64xf32>
    %153 = vector.extract_strided_slice %142 {offsets = [0, 192], sizes = [1, 64], strides = [1, 1]} : vector<1x320xf32> to vector<1x64xf32>
    %154 = arith.maximumf %152, %153 : vector<1x64xf32>
    %155 = tpu.concatenate %145, %148, %151, %154 in 1 : vector<1x64xf32>, vector<1x64xf32>, vector<1x64xf32>, vector<1x64xf32> -> vector<1x256xf32>
    %156 = vector.extract_strided_slice %121 {offsets = [7, 0], sizes = [5, 320], strides = [1, 1]} : vector<14x320xf32> to vector<5x320xf32>
    %157 = vector.extract_strided_slice %124 {offsets = [8, 0], sizes = [5, 320], strides = [1, 1]} : vector<14x320xf32> to vector<5x320xf32>
    %158 = arith.addf %156, %157 : vector<5x320xf32>
    %159 = vector.extract_strided_slice %127 {offsets = [9, 0], sizes = [5, 320], strides = [1, 1]} : vector<14x320xf32> to vector<5x320xf32>
    %160 = arith.addf %158, %159 : vector<5x320xf32>
    %161 = vector.broadcast %11 : vector<1x320xf32> to vector<5x320xf32>
    %162 = arith.addf %160, %161 : vector<5x320xf32>
    %cst_29 = arith.constant 0.000000e+00 : f32
    %163 = vector.broadcast %cst_29 : f32 to vector<5x320xf32>
    %164 = arith.maximumf %162, %163 : vector<5x320xf32>
    %165 = vector.extract_strided_slice %164 {offsets = [0, 0], sizes = [1, 320], strides = [1, 1]} : vector<5x320xf32> to vector<1x320xf32>
    %166 = vector.extract_strided_slice %164 {offsets = [1, 0], sizes = [1, 320], strides = [1, 1]} : vector<5x320xf32> to vector<1x320xf32>
    %167 = arith.maximumf %165, %166 : vector<1x320xf32>
    %168 = vector.extract_strided_slice %164 {offsets = [2, 0], sizes = [1, 320], strides = [1, 1]} : vector<5x320xf32> to vector<1x320xf32>
    %169 = vector.extract_strided_slice %164 {offsets = [3, 0], sizes = [1, 320], strides = [1, 1]} : vector<5x320xf32> to vector<1x320xf32>
    %170 = arith.maximumf %168, %169 : vector<1x320xf32>
    %171 = vector.extract_strided_slice %167 {offsets = [0, 0], sizes = [1, 64], strides = [1, 1]} : vector<1x320xf32> to vector<1x64xf32>
    %172 = vector.extract_strided_slice %167 {offsets = [0, 64], sizes = [1, 64], strides = [1, 1]} : vector<1x320xf32> to vector<1x64xf32>
    %173 = arith.maximumf %171, %172 : vector<1x64xf32>
    %174 = vector.extract_strided_slice %167 {offsets = [0, 128], sizes = [1, 64], strides = [1, 1]} : vector<1x320xf32> to vector<1x64xf32>
    %175 = vector.extract_strided_slice %167 {offsets = [0, 192], sizes = [1, 64], strides = [1, 1]} : vector<1x320xf32> to vector<1x64xf32>
    %176 = arith.maximumf %174, %175 : vector<1x64xf32>
    %177 = vector.extract_strided_slice %170 {offsets = [0, 0], sizes = [1, 64], strides = [1, 1]} : vector<1x320xf32> to vector<1x64xf32>
    %178 = vector.extract_strided_slice %170 {offsets = [0, 64], sizes = [1, 64], strides = [1, 1]} : vector<1x320xf32> to vector<1x64xf32>
    %179 = arith.maximumf %177, %178 : vector<1x64xf32>
    %180 = vector.extract_strided_slice %170 {offsets = [0, 128], sizes = [1, 64], strides = [1, 1]} : vector<1x320xf32> to vector<1x64xf32>
    %181 = vector.extract_strided_slice %170 {offsets = [0, 192], sizes = [1, 64], strides = [1, 1]} : vector<1x320xf32> to vector<1x64xf32>
    %182 = arith.maximumf %180, %181 : vector<1x64xf32>
    %183 = tpu.concatenate %173, %176, %179, %182 in 1 : vector<1x64xf32>, vector<1x64xf32>, vector<1x64xf32>, vector<1x64xf32> -> vector<1x256xf32>
    %184 = tpu.concatenate %155, %183 in 0 : vector<1x256xf32>, vector<1x256xf32> -> vector<2x256xf32>
    %c0_30 = arith.constant 0 : index
    %c0_31 = arith.constant 0 : index
    %185 = vector.load %arg6[%c0_30, %c0_31] : memref<256x128xf32, #tpu.memory_space<vmem>>, vector<256x128xf32>
    %cst_32 = arith.constant dense<0.000000e+00> : vector<2x128xf32>
    %186 = tpu.matmul %184, %185, %cst_32 {dimension_numbers = #tpu.dot_dimension_numbers<[1], [0], [0], [1], [0, 0, 1, 1], [], []>} : vector<2x256xf32>, vector<256x128xf32>, vector<2x128xf32> -> vector<2x128xf32>
    %c0_33 = arith.constant 0 : index
    %c0_34 = arith.constant 0 : index
    %187 = vector.load %arg7[%c0_33, %c0_34] : memref<1x128xf32, #tpu.memory_space<vmem>>, vector<1x128xf32>
    %188 = vector.broadcast %187 : vector<1x128xf32> to vector<2x128xf32>
    %189 = arith.addf %186, %188 : vector<2x128xf32>
    %cst_35 = arith.constant 0.000000e+00 : f32
    %190 = vector.broadcast %cst_35 : f32 to vector<2x128xf32>
    %191 = arith.maximumf %189, %190 : vector<2x128xf32>
    %c0_36 = arith.constant 0 : index
    %c0_37 = arith.constant 0 : index
    %192 = vector.load %arg8[%c0_36, %c0_37] : memref<128x3xf32, #tpu.memory_space<vmem>>, vector<128x3xf32>
    %cst_38 = arith.constant dense<0.000000e+00> : vector<2x3xf32>
    %193 = tpu.matmul %191, %192, %cst_38 {dimension_numbers = #tpu.dot_dimension_numbers<[1], [0], [0], [1], [0, 0, 1, 1], [], []>} : vector<2x128xf32>, vector<128x3xf32>, vector<2x3xf32> -> vector<2x3xf32>
    %c0_39 = arith.constant 0 : index
    %c0_40 = arith.constant 0 : index
    %194 = vector.load %arg9[%c0_39, %c0_40] : memref<1x3xf32, #tpu.memory_space<vmem>>, vector<1x3xf32>
    %195 = vector.broadcast %194 : vector<1x3xf32> to vector<2x3xf32>
    %196 = arith.addf %193, %195 : vector<2x3xf32>
    %cst_41 = arith.constant 0.000000e+00 : f32
    %197 = vector.broadcast %cst_41 : f32 to vector<2x3xf32>
    %198 = arith.maximumf %196, %197 : vector<2x3xf32>
    %c0_42 = arith.constant 0 : index
    %c0_43 = arith.constant 0 : index
    %199 = vector.load %arg10[%c0_42, %c0_43] : memref<2x3xf32, #tpu.memory_space<vmem>>, vector<2x3xf32>
    tpu.vector_store %arg10[%c0_42, %c0_43], %198 {strides = array<i32>} : memref<2x3xf32, #tpu.memory_space<vmem>>, vector<2x3xf32>,
    return
  }
  func.func @transform_0(%arg0: i32) -> (i32, i32) {
    %c0_i32 = arith.constant 0 : i32
    %c0_i32_0 = arith.constant 0 : i32
    %c0_i32_1 = arith.constant 0 : i32
    return %c0_i32, %c0_i32_0 : i32, i32
  }
  func.func @transform_1(%arg0: i32) -> (i32, i32, i32) {
    %c0_i32 = arith.constant 0 : i32
    %c0_i32_0 = arith.constant 0 : i32
    %c0_i32_1 = arith.constant 0 : i32
    %c0_i32_2 = arith.constant 0 : i32
    return %c0_i32, %c0_i32_0, %c0_i32_1 : i32, i32, i32
  }
  func.func @transform_2(%arg0: i32) -> (i32, i32) {
    %c0_i32 = arith.constant 0 : i32
    %c0_i32_0 = arith.constant 0 : i32
    %c0_i32_1 = arith.constant 0 : i32
    return %c0_i32, %c0_i32_0 : i32, i32
  }
  func.func @transform_3(%arg0: i32) -> (i32, i32, i32) {
    %c0_i32 = arith.constant 0 : i32
    %c0_i32_0 = arith.constant 0 : i32
    %c0_i32_1 = arith.constant 0 : i32
    %c0_i32_2 = arith.constant 0 : i32
    return %c0_i32, %c0_i32_0, %c0_i32_1 : i32, i32, i32
  }
  func.func @transform_4(%arg0: i32) -> (i32, i32) {
    %c0_i32 = arith.constant 0 : i32
    %c0_i32_0 = arith.constant 0 : i32
    %c0_i32_1 = arith.constant 0 : i32
    return %c0_i32, %c0_i32_0 : i32, i32
  }
  func.func @transform_5(%arg0: i32) -> (i32, i32) {
    %c0_i32 = arith.constant 0 : i32
    %c0_i32_0 = arith.constant 0 : i32
    %c0_i32_1 = arith.constant 0 : i32
    return %c0_i32, %c0_i32_0 : i32, i32
  }
  func.func @transform_6(%arg0: i32) -> (i32, i32) {
    %c0_i32 = arith.constant 0 : i32
    %c0_i32_0 = arith.constant 0 : i32
    %c0_i32_1 = arith.constant 0 : i32
    return %c0_i32, %c0_i32_0 : i32, i32
  }
  func.func @transform_7(%arg0: i32) -> (i32, i32) {
    %c0_i32 = arith.constant 0 : i32
    %c0_i32_0 = arith.constant 0 : i32
    %c0_i32_1 = arith.constant 0 : i32
    return %c0_i32, %c0_i32_0 : i32, i32
  }
  func.func @transform_8(%arg0: i32) -> (i32, i32) {
    %c0_i32 = arith.constant 0 : i32
    %c0_i32_0 = arith.constant 0 : i32
    %c0_i32_1 = arith.constant 0 : i32
    return %c0_i32, %c0_i32_0 : i32, i32
  }
  func.func @transform_9(%arg0: i32) -> (i32, i32) {
    %c0_i32 = arith.constant 0 : i32
    %c0_i32_0 = arith.constant 0 : i32
    %c0_i32_1 = arith.constant 0 : i32
    return %c0_i32, %c0_i32_0 : i32, i32
  }
}

</mosaic_0001>

<bundles_post_ra>
// kernel: net_forward.1
= control target key start
LH: loop header
LB: loop body
LE: loop exit
PB: predicated region body
PF: predicated region fallthrough
CT: control target
= control target key end

     0   :  { %v2473_v7 = vmov 0.0   ;;  %vm45_vm0 = vcmask 130048   ;;  %s3706_s0 = inlined_call_operand.vmem [shape: f32[32,16], index: 0, kind: input, shape index: {}]   ;;  %s3707_s1 = inlined_call_operand.vmem [shape: f32[3,16,448], index: 1, kind: input, shape index: {}]   ;;  %s3708_s2 = inlined_call_operand.vmem [shape: f32[1,448], index: 2, kind: input, shape index: {}]   ;;  %s3709_s3 = inlined_call_operand.vmem [shape: f32[3,224,320], index: 3, kind: input, shape index: {}]   ;;  %s3710_s4 = inlined_call_operand.vmem [shape: f32[1,320], index: 4, kind: input, shape index: {}]   ;;  %s3711_s5 = inlined_call_operand.vmem [shape: f32[256,128], index: 5, kind: input, shape index: {}]   ;;  %s3712_s6 = inlined_call_operand.vmem [shape: f32[1,128], index: 6, kind: input, shape index: {}]   ;;  %s3713_s7 = inlined_call_operand.vmem [shape: f32[128,3], index: 7, kind: input, shape index: {}]   ;;  %s3714_s8 = inlined_call_operand.vmem [shape: f32[1,3], index: 8, kind: input, shape index: {}]   ;;  %s3715_s9 = inlined_call_operand.hbm [shape: f32[2,3], index: 9, kind: output, shape index: {}]  }
   0x1   :  { %v38_v0 = vld [vmem:[%s3707_s1 + $0x8] sm:$0xff]  ;;  %v40_v2 = vld [vmem:[%s3707_s1 + $0x18] sm:$0xff]  ;;  %v37_v5 = vld [vmem:[%s3707_s1] sm:$0xff]  ;;  %122 = vmatprep.mubr.f32.mxu0 %v2473_v7  ;;  %211 = vmatprep.mubr.f32.mxu1 %v2473_v7 }
   0x2   :  { %v42_v1 = vld [vmem:[%s3707_s1 + $0x28] sm:$0xff]  ;;  %v44_v4 = vld [vmem:[%s3707_s1 + $0x38] sm:$0xff]  ;;  %v41_v6 = vld [vmem:[%s3707_s1 + $0x20] sm:$0xff] }
   0x3   :  { %v2154_v3 = vpack.c.bf16 %v42_v1, %v38_v0  ;;  %v2158_v8 = vpack.c.bf16 %v44_v4, %v40_v2  ;;  %v2156_v9 = vpack.c.bf16 %v41_v6, %v37_v5  ;;  %v39_v10 = vld [vmem:[%s3707_s1 + $0x10] sm:$0xff]  ;;  %v2559_v12 = vld [vmem:[%s3706_s0] sm:$0xff]  ;;  %v1918_v14 = vld [vmem:[%s3707_s1 + $0x58] sm:$0xff] }
   0x4   :  { %v43_v11 = vld [vmem:[%s3707_s1 + $0x30] sm:$0xff]  ;;  %v1922_v15 = vld [vmem:[%s3707_s1 + $0x78] sm:$0xff]  ;;  %v1916_v16 = vld [vmem:[%s3707_s1 + $0x48] sm:$0xff] }
   0x5   :  { %2155 = vmatprep.subr.bf16.mxu0 %v2154_v3  ;;  %v2160_v13 = vpack.c.bf16 %v43_v11, %v39_v10  ;;  %2159 = vmatprep.subr.bf16.mxu1 %v2158_v8  ;;  %v2166_v17 = vpack.c.bf16 %v1922_v15, %v1918_v14  ;;  %v1920_v18 = vld [vmem:[%s3707_s1 + $0x68] sm:$0xff]  ;;  %v1917_v19 = vld [vmem:[%s3707_s1 + $0x50] sm:$0xff]  ;;  %v1915_v23 = vld [vmem:[%s3707_s1 + $0x40] sm:$0xff] }
   0x6   :  { %2157 = vmatpush1.bf16.msra.mxu0 %v2156_v9  ;;  %v1921_v20 = vld [vmem:[%s3707_s1 + $0x70] sm:$0xff]  ;;  %v2162_v21 = vpack.c.bf16 %v1920_v18, %v1916_v16  ;;  %v1919_v24 = vld [vmem:[%s3707_s1 + $0x60] sm:$0xff]  ;;  %v1934_v26 = vld [vmem:[%s3707_s1 + $0x98] sm:$0xff] }
   0x7   :  { %2161 = vmatpush1.bf16.msra.mxu1 %v2160_v13  ;;  %v2168_v22 = vpack.c.bf16 %v1921_v20, %v1917_v19  ;;  %v2164_v25 = vpack.c.bf16 %v1919_v24, %v1915_v23  ;;  %v1938_v27 = vld [vmem:[%s3707_s1 + $0xb8] sm:$0xff]  ;;  %v1932_v28 = vld [vmem:[%s3707_s1 + $0x88] sm:$0xff] }
   0x8   :  { %2167 = vmatprep.subr.bf16.mxu1 %v2166_v17  ;;  %2163 = vmatprep.subr.bf16.mxu0 %v2162_v21  ;;  %v1936_v29 = vld [vmem:[%s3707_s1 + $0xa8] sm:$0xff]  ;;  %v2174_v31 = vpack.c.bf16 %v1938_v27, %v1934_v26 }
   0x9   :  { %1907 = vmatmul.mubr.msk.f32.vlgmr.msra.gmra.mrb[0].mxu0 %vm45_vm0, %v2559_v12  ;;  %v34_v30 = vld [vmem:[%s3706_s0 + $0x8] sm:$0xff]  ;;  %v2170_v32 = vpack.c.bf16 %v1936_v29, %v1932_v28 }
   0xa   :  { %1911 = vmatmul.mubr.msk.f32.vlgmr.msra.gmra.mrb[0].mxu1 %vm45_vm0, %v2559_v12  ;;  %2165 = vmatpush1.bf16.msra.mxu0 %v2164_v25 }
   0xb   :  { %2169 = vmatpush1.bf16.msra.mxu1 %v2168_v22  ;;  %128 = vmatprep.mubr.f32.mxu0 %v2473_v7 }
   0xc   :  { %14 = vsyncpa [#allocation3], 0  ;;  %217 = vmatprep.mubr.f32.mxu1 %v2473_v7  ;;  %2175 = vmatprep.subr.bf16.mxu1 %v2174_v31  ;;  %v35_v33 = vld [vmem:[%s3706_s0 + $0x10] sm:$0xff]  ;;  %v36_v34 = vld [vmem:[%s3706_s0 + $0x18] sm:$0xff]  ;;  %v687_v60 = vlaneseq  ;;  %vm620_vm1 = vcmask 1046528   ;;  %vm657_vm2 = vcmask 1045504  }
   0xd   :  { %1908 = vmatmul.mubr.msk.f32.gmra.mrb[2].mxu0 %vm45_vm0, %v34_v30  ;;  %2171 = vmatprep.subr.bf16.mxu0 %v2170_v32  ;;  %v1931_v35 = vld [vmem:[%s3707_s1 + $0x80] sm:$0xff]  ;;  %v1933_v37 = vld [vmem:[%s3707_s1 + $0x90] sm:$0xff]  ;;  %vm811_vm3 = vcmask 1040384   ;;  %vm816_vm4 = vcmask 1041408   ;;  %vm821_vm5 = vcmask 1042432   ;;  %vm826_vm6 = vcmask 1043456  }
   0xe   :  { %1912 = vmatmul.mubr.msk.f32.gmra.mrb[2].mxu1 %vm45_vm0, %v34_v30  ;;  %134 = vmatprep.mubr.f32.mxu0 %v2473_v7  ;;  %v1935_v36 = vld [vmem:[%s3707_s1 + $0xa0] sm:$0xff]  ;;  %v1937_v38 = vld [vmem:[%s3707_s1 + $0xb0] sm:$0xff]  ;;  %v2678_v3 = vshrl.u32 %v687_v60, 7  ;;  %vm831_vm7 = vcmask 1044480   ;;  %s2475_s23 = smov 64   ;;  %s2476_s0 = smov 32  }
   0xf   :  { %223 = vmatprep.mubr.f32.mxu1 %v2473_v7  ;;  %v2172_v39 = vpack.c.bf16 %v1935_v36, %v1931_v35  ;;  %v2176_v40 = vpack.c.bf16 %v1937_v38, %v1933_v37  ;;  %vm879_vm8 = vcmask 261120   ;;  %vm881_vm9 = vcmask 523264   ;;  %s2479_s16 = smov [#allocation2]  }
  0x10   :  { %v689_v29 = vsub.s32 0, %v2678_v3  ;;  %v693_v35 = vsub.s32 1, %v2678_v3  ;;  %v701_v36 = vsub.s32 3, %v2678_v3  ;;  %vm883_vm10 = vcmask 785408   ;;  %s1899_s17 = sshll.u32 %s2479_s16, 4  ;;  %s1900_s17 = int_to_ptr.vmem [resolvable:$true] %s1899_s17 }
  0x11   :  { %1909 = vmatmul.mubr.msk.f32.gmra.mrb[4].mxu0 %vm45_vm0, %v35_v33  ;;  %vm2478_vm11 = vmmov 0   ;;  %vm1891_vm12 = vcmask 17408   ;;  %s2449_s18 = scalar_lea.vmem %s1900_s17, 32  ;;  %p2454_p1 = scmp.lt.s32.totalorder %s1900_s17, %s1900_s17 }
  0x12   :  { %1913 = vmatmul.mubr.msk.f32.gmra.mrb[4].mxu1 %vm45_vm0, %v35_v33  ;;  %140 = vmatprep.mubr.f32.mxu0 %v2473_v7  ;;  %p2450_p0 = scmp.ne.s32.totalorder %s1900_s17, %s2449_s18  ;;  %p2455_p2 = scmp.lt.s32.totalorder %s2449_s18, %s2449_s18 }
  0x13   :  { %229 = vmatprep.mubr.f32.mxu1 %v2473_v7 }
  0x14   :  { %p2456_p3 = por %p2455_p2, %p2454_p1 }
  0x15   :  { %1910 = vmatmul.mubr.msk.f32.gmra.mrb[6].mxu0 %vm45_vm0, %v36_v34 }
  0x16   :  { %1914 = vmatmul.mubr.msk.f32.gmra.mrb[6].mxu1 %vm45_vm0, %v36_v34  ;;  %309 = vmatprep.mubr.f32.mxu0 %v2473_v7  ;;  %p2457_p4 = pnand %p2456_p3, %p2450_p0 }
  0x17   :  { %398 = vmatprep.mubr.f32.mxu1 %v2473_v7 }
  0x19   :  { %1923 = vmatmul.mubr.msk.f32.vlgmr.msra.gmra.mrb[8].mxu0 %vm45_vm0, %v2559_v12 }
  0x1a   :  { %1927 = vmatmul.mubr.msk.f32.vlgmr.msra.gmra.mrb[8].mxu1 %vm45_vm0, %v2559_v12  ;;  %2173 = vmatpush1.bf16.msra.mxu0 %v2172_v39 }
  0x1b   :  { %2177 = vmatpush1.bf16.msra.mxu1 %v2176_v40  ;;  %315 = vmatprep.mubr.f32.mxu0 %v2473_v7 }
  0x1c   :  { %404 = vmatprep.mubr.f32.mxu1 %v2473_v7 }
  0x1d   :  { %1924 = vmatmul.mubr.msk.f32.gmra.mrb[10].mxu0 %vm45_vm0, %v34_v30 }
  0x1e   :  { %1928 = vmatmul.mubr.msk.f32.gmra.mrb[10].mxu1 %vm45_vm0, %v34_v30  ;;  %321 = vmatprep.mubr.f32.mxu0 %v2473_v7 }
  0x1f   :  { %410 = vmatprep.mubr.f32.mxu1 %v2473_v7 }
  0x21   :  { %1925 = vmatmul.mubr.msk.f32.gmra.mrb[12].mxu0 %vm45_vm0, %v35_v33 }
  0x22   :  { %1929 = vmatmul.mubr.msk.f32.gmra.mrb[12].mxu1 %vm45_vm0, %v35_v33  ;;  %327 = vmatprep.mubr.f32.mxu0 %v2473_v7 }
  0x23   :  { %416 = vmatprep.mubr.f32.mxu1 %v2473_v7 }
  0x25   :  { %1926 = vmatmul.mubr.msk.f32.gmra.mrb[14].mxu0 %vm45_vm0, %v36_v34 }
  0x26   :  { %1930 = vmatmul.mubr.msk.f32.gmra.mrb[14].mxu1 %vm45_vm0, %v36_v34  ;;  %496 = vmatprep.mubr.f32.mxu0 %v2473_v7 }
  0x27   :  { %585 = vmatprep.mubr.f32.mxu1 %v2473_v7 }
  0x29   :  { %1939 = vmatmul.mubr.msk.f32.vlgmr.msra.gmra.mrb[16].mxu0 %vm45_vm0, %v2559_v12 }
  0x2a   :  { %1943 = vmatmul.mubr.msk.f32.vlgmr.msra.gmra.mrb[16].mxu1 %vm45_vm0, %v2559_v12  ;;  %502 = vmatprep.mubr.f32.mxu0 %v2473_v7 }
  0x2b   :  { %591 = vmatprep.mubr.f32.mxu1 %v2473_v7 }
  0x2d   :  { %1940 = vmatmul.mubr.msk.f32.gmra.mrb[18].mxu0 %vm45_vm0, %v34_v30 }
  0x2e   :  { %1944 = vmatmul.mubr.msk.f32.gmra.mrb[18].mxu1 %vm45_vm0, %v34_v30  ;;  %508 = vmatprep.mubr.f32.mxu0 %v2473_v7  ;;  %v697_v30 = vsub.s32 2, %v2678_v3 }
  0x2f   :  { %597 = vmatprep.mubr.f32.mxu1 %v2473_v7 }
  0x31   :  { %1941 = vmatmul.mubr.msk.f32.gmra.mrb[20].mxu0 %vm45_vm0, %v35_v33 }
  0x32   :  { %1945 = vmatmul.mubr.msk.f32.gmra.mrb[20].mxu1 %vm45_vm0, %v35_v33  ;;  %514 = vmatprep.mubr.f32.mxu0 %v2473_v7 }
  0x33   :  { %603 = vmatprep.mubr.f32.mxu1 %v2473_v7 }
  0x35   :  { %1942 = vmatmul.mubr.msk.f32.gmra.mrb[22].mxu0 %vm45_vm0, %v36_v34 }
  0x36   :  { %1946 = vmatmul.mubr.msk.f32.gmra.mrb[22].mxu1 %vm45_vm0, %v36_v34 }
  0xdc   :  { %v124_v41 = vpop.f32.mrb[0].mxu0 }
  0xdd   :  { %v213_v42 = vpop.f32.mrb[0].mxu1  ;;  %v126_v43 = vpop.f32.mrb[1].mxu0 }
  0xde   :  { %v215_v44 = vpop.f32.mrb[1].mxu1 }
  0xe0   :  { %v130_v45 = vpop.f32.mrb[2].mxu0 }
  0xe1   :  { %v219_v46 = vpop.f32.mrb[2].mxu1  ;;  %v132_v47 = vpop.f32.mrb[3].mxu0 }
  0xe2   :  { %v221_v48 = vpop.f32.mrb[3].mxu1 }
  0xe4   :  { %v136_v49 = vpop.f32.mrb[4].mxu0 }
  0xe5   :  { %v2670_v50 = vpop.f32.mrb[4].mxu1  ;;  %v2672_v51 = vpop.f32.mrb[5].mxu0 }
  0xe6   :  { %v2674_v52 = vpop.f32.mrb[5].mxu1 }
  0xe8   :  { %v142_v53 = vpop.f32.mrb[6].mxu0 }
  0xe9   :  { %v231_v54 = vpop.f32.mrb[6].mxu1  ;;  %v144_v55 = vpop.f32.mrb[7].mxu0 }
  0xea   :  { %v2676_v56 = vpop.f32.mrb[7].mxu1 }
  0xec   :  { %v311_v57 = vpop.f32.mrb[8].mxu0 }
  0xed   :  { %v400_v58 = vpop.f32.mrb[8].mxu1  ;;  %v313_v59 = vpop.f32.mrb[9].mxu0  ;;  %v621_v63 = vrot.slane %v311_v57, 1 }
  0xee   :  { %v402_v61 = vpop.f32.mrb[9].mxu1  ;;  %v627_v4 = vrot.slane %v400_v58, 1  ;;  %v624_v5 = vrot.slane %v313_v59, 1 }
  0xef   :  { %v630_v10 = vrot.slane %v402_v61, 1 }
  0xf0   :  { %v317_v62 = vpop.f32.mrb[10].mxu0 }
  0xf1   :  { %v622_v0 = vrot.slane %v317_v62, 1  ;;  %v406_v1 = vpop.f32.mrb[10].mxu1  ;;  %v319_v2 = vpop.f32.mrb[11].mxu0 }
  0xf2   :  { %v628_v6 = vrot.slane %v406_v1, 1  ;;  %v625_v8 = vrot.slane %v319_v2, 1  ;;  %v408_v9 = vpop.f32.mrb[11].mxu1 }
  0xf3   :  { %v623_v11 = vsel %vm620_vm1, %v621_v63, %v622_v0  ;;  %v2681_v12 = vadd.f32 %v622_v0, %v130_v45  ;;  %v631_v13 = vrot.slane %v408_v9, 1 }
  0xf4   :  { %v2683_v14 = vadd.f32 %v623_v11, %v124_v41  ;;  %v629_v15 = vsel %vm620_vm1, %v627_v4, %v628_v6  ;;  %v2686_v16 = vadd.f32 %v628_v6, %v219_v46  ;;  %v626_v17 = vsel %vm620_vm1, %v624_v5, %v625_v8  ;;  %v323_v18 = vpop.f32.mrb[12].mxu0 }
  0xf5   :  { %v2689_v19 = vadd.f32 %v629_v15, %v213_v42  ;;  %v2691_v20 = vadd.f32 %v626_v17, %v126_v43  ;;  %v2693_v21 = vadd.f32 %v625_v8, %v132_v47  ;;  %v632_v22 = vsel %vm620_vm1, %v630_v10, %v631_v13  ;;  %v412_v23 = vpop.f32.mrb[12].mxu1  ;;  %v325_v24 = vpop.f32.mrb[13].mxu0 }
  0xf6   :  { %v2696_v25 = vadd.f32 %v632_v22, %v215_v44  ;;  %v2698_v26 = vadd.f32 %v631_v13, %v221_v48  ;;  %v414_v27 = vpop.f32.mrb[13].mxu1  ;;  %v895_v31 = vrot.slane %v323_v18, 1  ;;  %v901_v37 = vrot.slane %v412_v23, 1 }
  0xf7   :  { %v898_v38 = vrot.slane %v325_v24, 1  ;;  %v904_v42 = vrot.slane %v414_v27, 1 }
  0xf8   :  { %v329_v28 = vpop.f32.mrb[14].mxu0 }
  0xf9   :  { %v896_v32 = vrot.slane %v329_v28, 1  ;;  %v418_v33 = vpop.f32.mrb[14].mxu1  ;;  %v331_v34 = vpop.f32.mrb[15].mxu0 }
  0xfa   :  { %v902_v39 = vrot.slane %v418_v33, 1  ;;  %v899_v40 = vrot.slane %v331_v34, 1  ;;  %v420_v41 = vpop.f32.mrb[15].mxu1 }
  0xfb   :  { %v897_v43 = vsel %vm620_vm1, %v895_v31, %v896_v32  ;;  %v2705_v44 = vadd.f32 %v896_v32, %v142_v53  ;;  %v905_v45 = vrot.slane %v420_v41, 1 }
  0xfc   :  { %v2707_v46 = vadd.f32 %v897_v43, %v136_v49  ;;  %v903_v47 = vsel %vm620_vm1, %v901_v37, %v902_v39  ;;  %v2710_v48 = vadd.f32 %v902_v39, %v231_v54  ;;  %v900_v57 = vsel %vm620_vm1, %v898_v38, %v899_v40  ;;  %v498_v58 = vpop.f32.mrb[16].mxu0  ;;  %v610_v54 = vld [vmem:[%s3708_s2] sm:$0xf]  ;;  %s2474_s2 = smov 96  }
  0xfd   :  { %v2714_v59 = vadd.f32 %v903_v47, %v2670_v50  ;;  %v2717_v60 = vadd.f32 %v900_v57, %v2672_v51  ;;  %v2719_v61 = vadd.f32 %v899_v40, %v144_v55  ;;  %v906_v53 = vsel %vm620_vm1, %v904_v42, %v905_v45  ;;  %v587_v62 = vpop.f32.mrb[16].mxu1  ;;  %v500_v49 = vpop.f32.mrb[17].mxu0 }
  0xfe   :  { %v2726_v63 = vadd.f32 %v906_v53, %v2674_v52  ;;  %v2729_v0 = vadd.f32 %v905_v45, %v2676_v56  ;;  %v589_v50 = vpop.f32.mrb[17].mxu1  ;;  %v2733_v51 = vrot.slane %v610_v54, %v689_v29  ;;  %v2735_v55 = vrot.slane %v610_v54, %v697_v30 }
  0xff   :  { %v658_v2 = vrot.slane %v498_v58, 2  ;;  %v2739_v52 = vrot.slane %v610_v54, %v693_v35  ;;  %v2741_v8 = vrot.slane %v610_v54, %v701_v36  ;;  %v664_v56 = vrot.slane %v587_v62, 2 }
 0x100   :  { %v504_v1 = vpop.f32.mrb[18].mxu0  ;;  %v661_v9 = vrot.slane %v500_v49, 2  ;;  %v667_v15 = vrot.slane %v589_v50, 2 }
 0x101   :  { %v659_v4 = vrot.slane %v504_v1, 2  ;;  %v593_v5 = vpop.f32.mrb[18].mxu1  ;;  %v506_v6 = vpop.f32.mrb[19].mxu0 }
 0x102   :  { %v665_v10 = vrot.slane %v593_v5, 2  ;;  %v662_v11 = vrot.slane %v506_v6, 2  ;;  %v595_v13 = vpop.f32.mrb[19].mxu1 }
 0x103   :  { %v660_v17 = vsel %vm657_vm2, %v658_v2, %v659_v4  ;;  %v682_v18 = vadd.f32 %v659_v4, %v2681_v12  ;;  %v668_v22 = vrot.slane %v595_v13, 2 }
 0x104   :  { %v678_v23 = vadd.f32 %v660_v17, %v2683_v14  ;;  %v666_v24 = vsel %vm657_vm2, %v664_v56, %v665_v10  ;;  %v684_v27 = vadd.f32 %v665_v10, %v2686_v16  ;;  %v663_v28 = vsel %vm657_vm2, %v661_v9, %v662_v11  ;;  %v510_v30 = vpop.f32.mrb[20].mxu0 }
 0x105   :  { %v711_v31 = vadd.f32 %v2733_v51, %v682_v18  ;;  %v680_v32 = vadd.f32 %v666_v24, %v2689_v19  ;;  %v679_v33 = vadd.f32 %v663_v28, %v2691_v20  ;;  %v683_v34 = vadd.f32 %v662_v11, %v2693_v21  ;;  %v599_v36 = vpop.f32.mrb[20].mxu1  ;;  %v512_v12 = vpop.f32.mrb[21].mxu0 }
 0x106   :  { %v707_v37 = vadd.f32 %v2733_v51, %v678_v23  ;;  %v713_v14 = vadd.f32 %v2735_v55, %v684_v27  ;;  %v669_v38 = vsel %vm657_vm2, %v667_v15, %v668_v22  ;;  %v685_v16 = vadd.f32 %v668_v22, %v2698_v26  ;;  %v601_v39 = vpop.f32.mrb[21].mxu1 }
 0x107   :  { %v719_v40 = vmax.f32 %v711_v31, 0.0  ;;  %v709_v41 = vadd.f32 %v2735_v55, %v680_v32  ;;  %v708_v19 = vadd.f32 %v2739_v52, %v679_v33  ;;  %v712_v20 = vadd.f32 %v2739_v52, %v683_v34 }
 0x108   :  { %v715_v42 = vmax.f32 %v707_v37, 0.0  ;;  %v721_v21 = vmax.f32 %v713_v14, 0.0  ;;  %v681_v43 = vadd.f32 %v669_v38, %v2696_v25  ;;  %v714_v45 = vadd.f32 %v2741_v8, %v685_v16  ;;  %v516_v47 = vpop.f32.mrb[22].mxu0 }
 0x109   :  { %v743_v57 = vrot.slane %v719_v40, 1  ;;  %v717_v58 = vmax.f32 %v709_v41, 0.0  ;;  %v716_v53 = vmax.f32 %v708_v19, 0.0  ;;  %v720_v62 = vmax.f32 %v712_v20, 0.0  ;;  %v605_v26 = vpop.f32.mrb[22].mxu1  ;;  %v518_v49 = vpop.f32.mrb[23].mxu0 }
 0x10a   :  { %v727_v54 = vrot.slane %v715_v42, 1  ;;  %v745_v50 = vrot.slane %v721_v21, 1  ;;  %v710_v1 = vadd.f32 %v2741_v8, %v681_v43  ;;  %v722_v2 = vmax.f32 %v714_v45, 0.0  ;;  %v607_v4 = vpop.f32.mrb[23].mxu1 }
 0x10b   :  { %v729_v5 = vrot.slane %v717_v58, 1  ;;  %v728_v6 = vrot.slane %v716_v53, 1  ;;  %v744_v56 = vrot.slane %v720_v62, 1  ;;  %v2763_v9 = vmax.f32 %v719_v40, %v743_v57 }
 0x10c   :  { %v718_v25 = vmax.f32 %v710_v1, 0.0  ;;  %v746_v10 = vrot.slane %v722_v2, 1  ;;  %v2765_v11 = vmax.f32 %v715_v42, %v727_v54  ;;  %v2769_v15 = vmax.f32 %v721_v21, %v745_v50 }
 0x10d   :  { %v2767_v13 = vmax.f32 %v717_v58, %v729_v5  ;;  %v2771_v17 = vmax.f32 %v716_v53, %v728_v6  ;;  %v2773_v18 = vmax.f32 %v720_v62, %v744_v56  ;;  %v937_v24 = vrot.slane %v599_v36, 2 }
 0x10e   :  { %v730_v22 = vrot.slane %v718_v25, 1  ;;  %v2775_v23 = vmax.f32 %v722_v2, %v746_v10  ;;  %v931_v27 = vrot.slane %v510_v30, 2  ;;  %v932_v28 = vrot.slane %v516_v47, 2 }
 0x10f   :  { %v938_v31 = vrot.slane %v605_v26, 2  ;;  %v935_v32 = vrot.slane %v518_v49, 2  ;;  %v940_v34 = vrot.slane %v601_v39, 2  ;;  %v934_v37 = vrot.slane %v512_v12, 2 }
 0x110   :  { %v2777_v33 = vmax.f32 %v718_v25, %v730_v22  ;;  %v941_v14 = vrot.slane %v607_v4, 2  ;;  %v933_v38 = vsel %vm657_vm2, %v931_v27, %v932_v28  ;;  %v955_v16 = vadd.f32 %v932_v28, %v2705_v44 }
 0x111   :  { %v939_v40 = vsel %vm657_vm2, %v937_v24, %v938_v31  ;;  %v957_v41 = vadd.f32 %v938_v31, %v2710_v48  ;;  %v951_v19 = vadd.f32 %v933_v38, %v2707_v46  ;;  %v936_v36 = vsel %vm657_vm2, %v934_v37, %v935_v32 }
 0x112   :  { %v953_v30 = vadd.f32 %v939_v40, %v2714_v59  ;;  %v956_v20 = vadd.f32 %v935_v32, %v2719_v61  ;;  %v963_v39 = vadd.f32 %v955_v16, %v2733_v51  ;;  %v952_v42 = vadd.f32 %v936_v36, %v2717_v60 }
 0x113   :  { %v965_v12 = vadd.f32 %v957_v41, %v2735_v55  ;;  %v942_v44 = vsel %vm657_vm2, %v940_v34, %v941_v14  ;;  %v959_v21 = vadd.f32 %v951_v19, %v2733_v51  ;;  %v958_v47 = vadd.f32 %v941_v14, %v2729_v0 }
 0x114   :  { %v961_v48 = vadd.f32 %v953_v30, %v2735_v55  ;;  %v964_v46 = vadd.f32 %v956_v20, %v2739_v52  ;;  %v954_v59 = vadd.f32 %v942_v44, %v2726_v63  ;;  %v971_v43 = vmax.f32 %v963_v39, 0.0 }
 0x115   :  { %v973_v45 = vmax.f32 %v965_v12, 0.0  ;;  %v960_v61 = vadd.f32 %v952_v42, %v2739_v52  ;;  %v967_v57 = vmax.f32 %v959_v21, 0.0  ;;  %v966_v26 = vadd.f32 %v958_v47, %v2741_v8 }
 0x116   :  { %v969_v58 = vmax.f32 %v961_v48, 0.0  ;;  %v972_v60 = vmax.f32 %v964_v46, 0.0  ;;  %v962_v53 = vadd.f32 %v954_v59, %v2741_v8  ;;  %v995_v51 = vrot.slane %v971_v43, 1 }
 0x117   :  { %v997_v62 = vrot.slane %v973_v45, 1  ;;  %v968_v55 = vmax.f32 %v960_v61, 0.0  ;;  %v979_v63 = vrot.slane %v967_v57, 1  ;;  %v974_v1 = vmax.f32 %v966_v26, 0.0 }
 0x118   :  { %v981_v49 = vrot.slane %v969_v58, 1  ;;  %v996_v54 = vrot.slane %v972_v60, 1  ;;  %v970_v50 = vmax.f32 %v962_v53, 0.0  ;;  %v2799_v52 = vmax.f32 %v971_v43, %v995_v51 }
 0x119   :  { %v980_v0 = vrot.slane %v968_v55, 1  ;;  %v759_v2 = vrot.slane %v2765_v11, 1  ;;  %v2802_v4 = vmax.f32 %v967_v57, %v979_v63  ;;  %v760_v8 = vrot.slane %v2771_v17, 1 }
 0x11a   :  { %v2804_v5 = vmax.f32 %v972_v60, %v996_v54  ;;  %v982_v6 = vrot.slane %v970_v50, 1  ;;  %v989_v56 = vmax.f32 %v969_v58, %v981_v49  ;;  %v1005_v25 = vmax.f32 %v973_v45, %v997_v62 }
 0x11b   :  { %v2807_v10 = vmax.f32 %v968_v55, %v980_v0  ;;  %v998_v22 = vrot.slane %v974_v1, 1  ;;  %v1011_v24 = vrot.slane %v2802_v4, 1  ;;  %v1039_v27 = vrot.slane %v2799_v52, 4 }
 0x11c   :  { %v1047_v28 = vrot.slane %v2799_v52, 5  ;;  %v1040_v31 = vrot.slane %v2804_v5, 4  ;;  %v1048_v32 = vrot.slane %v2804_v5, 5  ;;  %v990_v34 = vmax.f32 %v970_v50, %v982_v6 }
 0x11d   :  { %v767_v37 = vrot.slane %v2765_v11, 2  ;;  %v768_v14 = vrot.slane %v2771_v17, 2  ;;  %v1012_v38 = vrot.slane %v2807_v10, 1  ;;  %v1006_v16 = vmax.f32 %v974_v1, %v998_v22 }
 0x11e   :  { %v775_v40 = vrot.slane %v2765_v11, 3  ;;  %v776_v41 = vrot.slane %v2771_v17, 3  ;;  %v787_v19 = vrot.slane %v2763_v9, 4  ;;  %v788_v30 = vrot.slane %v2773_v18, 4 }
 0x11f   :  { %v795_v36 = vrot.slane %v2763_v9, 5  ;;  %v796_v20 = vrot.slane %v2773_v18, 5  ;;  %v812_v39 = vsel %vm811_vm3, %v2765_v11, %v759_v2  ;;  %v813_v12 = vsel %vm811_vm3, %v2771_v17, %v760_v8 }
 0x120   :  { %v1013_v42 = vrot.slane %v989_v56, 1  ;;  %v1021_v44 = vrot.slane %v989_v56, 2  ;;  %v803_v21 = vrot.slane %v2763_v9, 6  ;;  %v804_v48 = vrot.slane %v2773_v18, 6 }
 0x121   :  { %v817_v46 = vsel %vm816_vm4, %v812_v39, %v767_v37  ;;  %v818_v59 = vsel %vm816_vm4, %v813_v12, %v768_v14  ;;  %v1029_v61 = vrot.slane %v989_v56, 3  ;;  %v1041_v47 = vrot.slane %v1005_v25, 4 }
 0x122   :  { %v822_v43 = vsel %vm821_vm5, %v817_v46, %v775_v40  ;;  %v823_v45 = vsel %vm821_vm5, %v818_v59, %v776_v41  ;;  %v1065_v57 = vsel %vm811_vm3, %v989_v56, %v1013_v42  ;;  %v1014_v58 = vrot.slane %v990_v34, 1 }
 0x123   :  { %v827_v11 = vsel %vm826_vm6, %v822_v43, %v787_v19  ;;  %v828_v17 = vsel %vm826_vm6, %v823_v45, %v788_v30  ;;  %v1069_v60 = vsel %vm816_vm4, %v1065_v57, %v1021_v44  ;;  %v1022_v53 = vrot.slane %v990_v34, 2 }
 0x124   :  { %v832_v9 = vsel %vm831_vm7, %v827_v11, %v795_v36  ;;  %v833_v18 = vsel %vm831_vm7, %v828_v17, %v796_v20  ;;  %v1049_v55 = vrot.slane %v1005_v25, 5  ;;  %v1073_v26 = vsel %vm821_vm5, %v1069_v60, %v1029_v61 }
 0x125   :  { %v2840_v51 = vsel %vm657_vm2, %v832_v9, %v803_v21  ;;  %v2843_v62 = vsel %vm657_vm2, %v833_v18, %v804_v48  ;;  %v1057_v49 = vrot.slane %v1005_v25, 6  ;;  %v1077_v54 = vsel %vm826_vm6, %v1073_v26, %v1041_v47 }
 0x126   :  { %v2409_v63 = vpack.i.bf16 %v2843_v62, %v2840_v51  ;;  %v1030_v50 = vrot.slane %v990_v34, 3  ;;  %v1081_v0 = vsel %vm831_vm7, %v1077_v54, %v1049_v55  ;;  %v1042_v1 = vrot.slane %v1006_v16, 4  ;;  %v1142_v54 = vld [vmem:[%s3709_s3 + $0x20] sm:$0xff] }
 0x127   :  { %v1066_v2 = vsel %vm811_vm3, %v990_v34, %v1014_v58  ;;  %v1019_v6 = vrot.slane %v2802_v4, 2  ;;  %v2854_v8 = vsel %vm657_vm2, %v1081_v0, %v1057_v49  ;;  %v1050_v56 = vrot.slane %v1006_v16, 5  ;;  %v1140_v49 = vld [vmem:[%s3709_s3 + $0x8] sm:$0xff]  ;;  %v1141_v0 = vld [vmem:[%s3709_s3 + $0x18] sm:$0xff] }
 0x128   :  { %2410 = vrot.lane.b32.xlu1 %v2409_v63, %s2474_s2  ;;  %v1070_v22 = vsel %vm816_vm4, %v1066_v2, %v1022_v53  ;;  %v1020_v25 = vrot.slane %v2807_v10, 2  ;;  %1098 = vrot.lane.b32.xlu0 %v2854_v8, %s2474_s2  ;;  %v1058_v37 = vrot.slane %v1006_v16, 6  ;;  %v1027_v34 = vrot.slane %v2802_v4, 3  ;;  %v1952_v2 = vld [vmem:[%s3709_s3 + $0x2c0] sm:$0xff] }
 0x129   :  { %v1074_v14 = vsel %vm821_vm5, %v1070_v22, %v1030_v50  ;;  %v1028_v40 = vrot.slane %v2807_v10, 3  ;;  %v1063_v19 = vsel %vm811_vm3, %v2802_v4, %v1011_v24  ;;  %v1064_v30 = vsel %vm811_vm3, %v2807_v10, %v1012_v38  ;;  %v1949_v22 = vld [vmem:[%s3709_s3 + $0x2a0] sm:$0xff] }
 0x12a   :  { %v1078_v41 = vsel %vm826_vm6, %v1074_v14, %v1042_v1  ;;  %v762_v36 = vrot.slane %v2777_v33, 1  ;;  %v1067_v16 = vsel %vm816_vm4, %v1063_v19, %v1019_v6  ;;  %v1068_v39 = vsel %vm816_vm4, %v1064_v30, %v1020_v25  ;;  %v1950_v1 = vld [vmem:[%s3709_s3 + $0x2a8] sm:$0xff]  ;;  %v1951_v25 = vld [vmem:[%s3709_s3 + $0x2b8] sm:$0xff] }
 0x12b   :  { %v1082_v20 = vsel %vm831_vm7, %v1078_v41, %v1050_v56  ;;  %v770_v12 = vrot.slane %v2777_v33, 2  ;;  %v1055_v44 = vrot.slane %v2799_v52, 6  ;;  %v1071_v4 = vsel %vm821_vm5, %v1067_v16, %v1027_v34  ;;  %v1146_v34 = vld [vmem:[%s3709_s3 + $0x50] sm:$0xff]  ;;  %v1145_v41 = vld [vmem:[%s3709_s3 + $0x48] sm:$0xff] }
 0x12c   :  { %v2874_v42 = vsel %vm657_vm2, %v1082_v20, %v1058_v37  ;;  %v1072_v24 = vsel %vm821_vm5, %v1068_v39, %v1028_v40  ;;  %v1056_v10 = vrot.slane %v2804_v5, 6  ;;  %v1075_v38 = vsel %vm826_vm6, %v1071_v4, %v1039_v27  ;;  %v1144_v37 = vld [vmem:[%s3709_s3 + $0x38] sm:$0xff]  ;;  %v1143_v40 = vld [vmem:[%s3709_s3 + $0x30] sm:$0xff]  ;;  %v1150_v4 = vld [vmem:[%s3709_s3 + $0x80] sm:$0xff] }
 0x12d   :  { %1103 = vrot.lane.b32.xlu1 %v2874_v42, %s2474_s2  ;;  %v1076_v21 = vsel %vm826_vm6, %v1072_v24, %v1040_v31  ;;  %v778_v48 = vrot.slane %v2777_v33, 3  ;;  %v1079_v46 = vsel %vm831_vm7, %v1075_v38, %v1047_v28  ;;  %v790_v43 = vrot.slane %v2775_v23, 4  ;;  %v1956_v20 = vld [vmem:[%s3709_s3 + $0x2f0] sm:$0xff]  ;;  %v1147_v38 = vld [vmem:[%s3709_s3 + $0x60] sm:$0xff] }
 0x12e   :  { %v1080_v59 = vsel %vm831_vm7, %v1076_v21, %v1048_v32  ;;  %v815_v45 = vsel %vm811_vm3, %v2777_v33, %v762_v36  ;;  %v2899_v27 = vsel %vm657_vm2, %v1079_v46, %v1055_v44  ;;  %v761_v52 = vrot.slane %v2767_v13, 1  ;;  %v1954_v36 = vld [vmem:[%s3709_s3 + $0x2d8] sm:$0xff]  ;;  %v1953_v16 = vld [vmem:[%s3709_s3 + $0x2d0] sm:$0xff]  ;;  %v1148_v44 = vld [vmem:[%s3709_s3 + $0x68] sm:$0xff] }
 0x12f   :  { %v2902_v31 = vsel %vm657_vm2, %v1080_v59, %v1056_v10  ;;  %v820_v61 = vsel %vm816_vm4, %v815_v45, %v770_v12  ;;  %v798_v28 = vrot.slane %v2775_v23, 5  ;;  %v769_v47 = vrot.slane %v2767_v13, 2  ;;  %v1955_v12 = vld [vmem:[%s3709_s3 + $0x2e8] sm:$0xff]  ;;  %v1149_v21 = vld [vmem:[%s3709_s3 + $0x78] sm:$0xff]  ;;  %v1960_v46 = vld [vmem:[%s3709_s3 + $0x320] sm:$0xff] }
 0x130   :  { %v2414_v5 = vpack.i.bf16 %v2902_v31, %v2899_v27  ;;  %v825_v32 = vsel %vm821_vm5, %v820_v61, %v778_v48  ;;  %v806_v33 = vrot.slane %v2775_v23, 6  ;;  %v777_v57 = vrot.slane %v2767_v13, 3  ;;  %v1958_v48 = vld [vmem:[%s3709_s3 + $0x308] sm:$0xff]  ;;  %v1957_v59 = vld [vmem:[%s3709_s3 + $0x300] sm:$0xff] }
 0x131   :  { %v830_v11 = vsel %vm826_vm6, %v825_v32, %v790_v43  ;;  %v814_v58 = vsel %vm811_vm3, %v2767_v13, %v761_v52  ;;  %v789_v18 = vrot.slane %v2769_v15, 4  ;;  %v797_v23 = vrot.slane %v2769_v15, 5  ;;  %v1959_v43 = vld [vmem:[%s3709_s3 + $0x318] sm:$0xff] }
 0x132   :  { %2415 = vrot.lane.b32.xlu0 %v2414_v5, %s2474_s2  ;;  %v835_v17 = vsel %vm831_vm7, %v830_v11, %v798_v28  ;;  %v819_v60 = vsel %vm816_vm4, %v814_v58, %v769_v47  ;;  %v805_v55 = vrot.slane %v2769_v15, 6  ;;  %v1139_v15 = vld [vmem:[%s3709_s3] sm:$0xff]  ;;  %v2178_v50 = vpack.c.bf16 %v1142_v54, %v1140_v49  ;;  %v1152_v52 = vld [vmem:[%s3709_s3 + $0x98] sm:$0xff]  ;;  %v1154_v5 = vld [vmem:[%s3709_s3 + $0xb0] sm:$0xff] }
 0x133   :  { %v2919_v9 = vsel %vm657_vm2, %v835_v17, %v806_v33  ;;  %v824_v53 = vsel %vm821_vm5, %v819_v60, %v777_v57  ;;  %v2180_v6 = vpack.c.bf16 %v1141_v0, %v1139_v15  ;;  %v2234_v56 = vpack.c.bf16 %v1952_v2, %v1950_v1  ;;  %v1151_v28 = vld [vmem:[%s3709_s3 + $0x90] sm:$0xff]  ;;  %v1153_v33 = vld [vmem:[%s3709_s3 + $0xa8] sm:$0xff]  ;;  %v1962_v11 = vld [vmem:[%s3709_s3 + $0x338] sm:$0xff] }
 0x134   :  { %856 = vrot.lane.b32.xlu1 %v2919_v9, %s2474_s2  ;;  %v829_v26 = vsel %vm826_vm6, %v824_v53, %v789_v18  ;;  %2179 = vmatprep.subr.bf16.mxu0 %v2178_v50  ;;  %v2236_v14 = vpack.c.bf16 %v1951_v25, %v1949_v22  ;;  %v2182_v19 = vpack.c.bf16 %v1146_v34, %v1144_v37  ;;  %v1964_v17 = vld [vmem:[%s3709_s3 + $0x350] sm:$0xff]  ;;  %v1963_v18 = vld [vmem:[%s3709_s3 + $0x348] sm:$0xff]  ;;  %v1155_v54 = vld [vmem:[%s3709_s3 + $0xc0] sm:$0xff] }
 0x135   :  { %v834_v13 = vsel %vm831_vm7, %v829_v26, %v797_v23  ;;  %2181 = vmatpush1.bf16.msra.mxu0 %v2180_v6  ;;  %2235 = vmatprep.subr.bf16.mxu1 %v2234_v56  ;;  %v2184_v30 = vpack.c.bf16 %v1145_v41, %v1143_v40  ;;  %v2238_v39 = vpack.c.bf16 %v1956_v20, %v1954_v36  ;;  %v1961_v58 = vld [vmem:[%s3709_s3 + $0x330] sm:$0xff]  ;;  %v1156_v60 = vld [vmem:[%s3709_s3 + $0xc8] sm:$0xff]  ;;  %v1158_v23 = vld [vmem:[%s3709_s3 + $0xe0] sm:$0xff] }
 0x136   :  { %v2931_v63 = vsel %vm657_vm2, %v834_v13, %v805_v55  ;;  %2237 = vmatpush1.bf16.msra.mxu1 %v2236_v14  ;;  %2183 = vmatprep.subr.bf16.mxu0 %v2182_v19  ;;  %v2240_v24 = vpack.c.bf16 %v1955_v12, %v1953_v16  ;;  %v2186_v10 = vpack.c.bf16 %v1150_v4, %v1148_v44  ;;  %v1966_v55 = vld [vmem:[%s3709_s3 + $0x368] sm:$0xff]  ;;  %v1968_v26 = vld [vmem:[%s3709_s3 + $0x380] sm:$0xff]  ;;  %v1157_v15 = vld [vmem:[%s3709_s3 + $0xd8] sm:$0xff] }
 0x137   :  { %851 = vrot.lane.b32.xlu0 %v2931_v63, %s2474_s2  ;;  %2239 = vmatprep.subr.bf16.mxu1 %v2238_v39  ;;  %v2188_v45 = vpack.c.bf16 %v1149_v21, %v1147_v38  ;;  %v2242_v61 = vpack.c.bf16 %v1960_v46, %v1958_v48  ;;  %v2244_v32 = vpack.c.bf16 %v1959_v43, %v1957_v59  ;;  %v1965_v50 = vld [vmem:[%s3709_s3 + $0x360] sm:$0xff]  ;;  %v1967_v1 = vld [vmem:[%s3709_s3 + $0x378] sm:$0xff]  ;;  %v1162_v6 = vld [vmem:[%s3709_s3 + $0x110] sm:$0xff] }
 0x138   :  { %v2190_v47 = vpack.c.bf16 %v1154_v5, %v1152_v52  ;;  %v2246_v57 = vpack.c.bf16 %v1964_v17, %v1962_v11  ;;  %v2192_v53 = vpack.c.bf16 %v1153_v33, %v1151_v28  ;;  %v2248_v13 = vpack.c.bf16 %v1963_v18, %v1961_v58  ;;  %v1160_v2 = vld [vmem:[%s3709_s3 + $0xf8] sm:$0xff]  ;;  %v1972_v22 = vld [vmem:[%s3709_s3 + $0x3b0] sm:$0xff]  ;;  %v1161_v40 = vld [vmem:[%s3709_s3 + $0x108] sm:$0xff] }
 0x139   :  { %2185 = vmatpush1.bf16.msra.mxu0 %v2184_v30  ;;  %v2194_v49 = vpack.c.bf16 %v1158_v23, %v1156_v60  ;;  %v2250_v0 = vpack.c.bf16 %v1968_v26, %v1966_v55  ;;  %v1970_v56 = vld [vmem:[%s3709_s3 + $0x398] sm:$0xff]  ;;  %v2196_v25 = vpack.c.bf16 %v1157_v15, %v1155_v54  ;;  %v2252_v37 = vpack.c.bf16 %v1967_v1, %v1965_v50  ;;  %v1159_v34 = vld [vmem:[%s3709_s3 + $0xf0] sm:$0xff]  ;;  %v1971_v30 = vld [vmem:[%s3709_s3 + $0x3a8] sm:$0xff] }
 0x13a   :  { %2241 = vmatpush1.bf16.msra.mxu1 %v2240_v24  ;;  %2187 = vmatprep.subr.bf16.mxu0 %v2186_v10  ;;  %v2198_v14 = vpack.c.bf16 %v1162_v6, %v1160_v2  ;;  %v1969_v41 = vld [vmem:[%s3709_s3 + $0x390] sm:$0xff]  ;;  %v2254_v19 = vpack.c.bf16 %v1972_v22, %v1970_v56  ;;  %v1164_v36 = vld [vmem:[%s3709_s3 + $0x128] sm:$0xff]  ;;  %v1166_v20 = vld [vmem:[%s3709_s3 + $0x140] sm:$0xff]  ;;  %v2200_v12 = vpack.c.bf16 %v1161_v40, %v1159_v34 }
 0x13b   :  { %2243 = vmatprep.subr.bf16.mxu1 %v2242_v61  ;;  %v1974_v16 = vld [vmem:[%s3709_s3 + $0x3c8] sm:$0xff]  ;;  %v1976_v39 = vld [vmem:[%s3709_s3 + $0x3e0] sm:$0xff]  ;;  %v2256_v44 = vpack.c.bf16 %v1971_v30, %v1969_v41  ;;  %v2202_v4 = vpack.c.bf16 %v1166_v20, %v1164_v36  ;;  %v1165_v10 = vld [vmem:[%s3709_s3 + $0x138] sm:$0xff] }
 0x13c   :  { %v1163_v24 = vld [vmem:[%s3709_s3 + $0x120] sm:$0xff]  ;;  %v2258_v21 = vpack.c.bf16 %v1976_v39, %v1974_v16  ;;  %v1975_v48 = vld [vmem:[%s3709_s3 + $0x3d8] sm:$0xff]  ;;  %v1170_v59 = vld [vmem:[%s3709_s3 + $0x170] sm:$0xff] }
 0x13d   :  { %2189 = vmatpush1.bf16.msra.mxu0 %v2188_v45  ;;  %v1973_v38 = vld [vmem:[%s3709_s3 + $0x3c0] sm:$0xff]  ;;  %v1168_v46 = vld [vmem:[%s3709_s3 + $0x158] sm:$0xff]  ;;  %v1980_v45 = vld [vmem:[%s3709_s3 + $0x410] sm:$0xff]  ;;  %v2204_v61 = vpack.c.bf16 %v1165_v10, %v1163_v24 }
 0x13e   :  { %2245 = vmatpush1.bf16.msra.mxu1 %v2244_v32  ;;  %2191 = vmatprep.subr.bf16.mxu0 %v2190_v47  ;;  %v1978_v43 = vld [vmem:[%s3709_s3 + $0x3f8] sm:$0xff]  ;;  %v2260_v52 = vpack.c.bf16 %v1975_v48, %v1973_v38  ;;  %v2206_v5 = vpack.c.bf16 %v1170_v59, %v1168_v46  ;;  %v1167_v28 = vld [vmem:[%s3709_s3 + $0x150] sm:$0xff]  ;;  %v1169_v32 = vld [vmem:[%s3709_s3 + $0x168] sm:$0xff] }
 0x13f   :  { %2247 = vmatprep.subr.bf16.mxu1 %v2246_v57  ;;  %v1977_v47 = vld [vmem:[%s3709_s3 + $0x3f0] sm:$0xff]  ;;  %v2262_v33 = vpack.c.bf16 %v1980_v45, %v1978_v43  ;;  %v1979_v11 = vld [vmem:[%s3709_s3 + $0x408] sm:$0xff]  ;;  %v1174_v57 = vld [vmem:[%s3709_s3 + $0x1a0] sm:$0xff]  ;;  %v2208_v60 = vpack.c.bf16 %v1169_v32, %v1167_v28 }
 0x140   :  { %v1172_v17 = vld [vmem:[%s3709_s3 + $0x188] sm:$0xff]  ;;  %v1984_v18 = vld [vmem:[%s3709_s3 + $0x440] sm:$0xff]  ;;  %v2264_v23 = vpack.c.bf16 %v1979_v11, %v1977_v47  ;;  %v1173_v26 = vld [vmem:[%s3709_s3 + $0x198] sm:$0xff] }
 0x141   :  { %2193 = vmatpush1.bf16.msra.mxu0 %v2192_v53  ;;  %v1982_v58 = vld [vmem:[%s3709_s3 + $0x428] sm:$0xff]  ;;  %v2210_v53 = vpack.c.bf16 %v1174_v57, %v1172_v17  ;;  %v1171_v55 = vld [vmem:[%s3709_s3 + $0x180] sm:$0xff]  ;;  %v1983_v15 = vld [vmem:[%s3709_s3 + $0x438] sm:$0xff] }
 0x142   :  { %2249 = vmatpush1.bf16.msra.mxu1 %v2248_v13  ;;  %2195 = vmatprep.subr.bf16.mxu0 %v2194_v49  ;;  %v2266_v13 = vpack.c.bf16 %v1984_v18, %v1982_v58  ;;  %v2212_v49 = vpack.c.bf16 %v1173_v26, %v1171_v55  ;;  %v1981_v54 = vld [vmem:[%s3709_s3 + $0x420] sm:$0xff]  ;;  %v1176_v50 = vld [vmem:[%s3709_s3 + $0x1b8] sm:$0xff]  ;;  %v1178_v1 = vld [vmem:[%s3709_s3 + $0x1d0] sm:$0xff] }
 0x143   :  { %2251 = vmatprep.subr.bf16.mxu1 %v2250_v0  ;;  %v2268_v0 = vpack.c.bf16 %v1983_v15, %v1981_v54  ;;  %v1175_v2 = vld [vmem:[%s3709_s3 + $0x1b0] sm:$0xff]  ;;  %v1177_v6 = vld [vmem:[%s3709_s3 + $0x1c8] sm:$0xff]  ;;  %v2214_v56 = vpack.c.bf16 %v1178_v1, %v1176_v50  ;;  %v1182_v30 = vld [vmem:[%s3709_s3 + $0x200] sm:$0xff] }
 0x144   :  { %v2216_v22 = vpack.c.bf16 %v1177_v6, %v1175_v2  ;;  %v1985_v34 = vld [vmem:[%s3709_s3 + $0x450] sm:$0xff]  ;;  %v1987_v40 = vld [vmem:[%s3709_s3 + $0x468] sm:$0xff]  ;;  %v1179_v36 = vld [vmem:[%s3709_s3 + $0x1e0] sm:$0xff] }
 0x145   :  { %2197 = vmatpush1.bf16.msra.mxu0 %v2196_v25  ;;  %v1986_v25 = vld [vmem:[%s3709_s3 + $0x458] sm:$0xff]  ;;  %v1180_v41 = vld [vmem:[%s3709_s3 + $0x1e8] sm:$0xff]  ;;  %v1989_v46 = vld [vmem:[%s3709_s3 + $0x480] sm:$0xff] }
 0x146   :  { %2253 = vmatpush1.bf16.msra.mxu1 %v2252_v37  ;;  %2199 = vmatprep.subr.bf16.mxu0 %v2198_v14  ;;  %v1988_v37 = vld [vmem:[%s3709_s3 + $0x470] sm:$0xff]  ;;  %v1181_v20 = vld [vmem:[%s3709_s3 + $0x1f8] sm:$0xff]  ;;  %v2218_v16 = vpack.c.bf16 %v1182_v30, %v1180_v41  ;;  %v1995_v57 = vld [vmem:[%s3709_s3 + $0x4c8] sm:$0xff] }
 0x147   :  { %2255 = vmatprep.subr.bf16.mxu1 %v2254_v19  ;;  %v2270_v14 = vpack.c.bf16 %v1988_v37, %v1986_v25  ;;  %v2272_v19 = vpack.c.bf16 %v1987_v40, %v1985_v34  ;;  %v2220_v39 = vpack.c.bf16 %v1181_v20, %v1179_v36  ;;  %v1991_v59 = vld [vmem:[%s3709_s3 + $0x498] sm:$0xff]  ;;  %v1186_v45 = vld [vmem:[%s3709_s3 + $0x230] sm:$0xff]  ;;  %v1188_v58 = vld [vmem:[%s3709_s3 + $0x248] sm:$0xff] }
 0x148   :  { %v1184_v43 = vld [vmem:[%s3709_s3 + $0x218] sm:$0xff]  ;;  %v1996_v32 = vld [vmem:[%s3709_s3 + $0x4d0] sm:$0xff]  ;;  %v1190_v55 = vld [vmem:[%s3709_s3 + $0x260] sm:$0xff] }
 0x149   :  { %2201 = vmatpush1.bf16.msra.mxu0 %v2200_v12  ;;  %v1990_v12 = vld [vmem:[%s3709_s3 + $0x488] sm:$0xff]  ;;  %v1994_v28 = vld [vmem:[%s3709_s3 + $0x4b8] sm:$0xff]  ;;  %v1993_v17 = vld [vmem:[%s3709_s3 + $0x4b0] sm:$0xff] }
 0x14a   :  { %2257 = vmatpush1.bf16.msra.mxu1 %v2256_v44  ;;  %2203 = vmatprep.subr.bf16.mxu0 %v2202_v4  ;;  %v1992_v44 = vld [vmem:[%s3709_s3 + $0x4a0] sm:$0xff]  ;;  %v2278_v47 = vpack.c.bf16 %v1996_v32, %v1994_v28  ;;  %v1999_v25 = vld [vmem:[%s3709_s3 + $0x4f8] sm:$0xff]  ;;  %v1193_v40 = vld [vmem:[%s3709_s3 + $0x288] sm:$0xff] }
 0x14b   :  { %2259 = vmatprep.subr.bf16.mxu1 %v2258_v21  ;;  %v2274_v4 = vpack.c.bf16 %v1992_v44, %v1990_v12  ;;  %v1187_v26 = vld [vmem:[%s3709_s3 + $0x240] sm:$0xff]  ;;  %v1192_v37 = vld [vmem:[%s3709_s3 + $0x278] sm:$0xff]  ;;  %v2004_v41 = vld [vmem:[%s3709_s3 + $0x530] sm:$0xff] }
 0x14c   :  { %v2000_v15 = vld [vmem:[%s3709_s3 + $0x500] sm:$0xff]  ;;  %v2001_v20 = vld [vmem:[%s3709_s3 + $0x510] sm:$0xff] }
 0x14d   :  { %2205 = vmatpush1.bf16.msra.mxu0 %v2204_v61  ;;  %v1185_v61 = vld [vmem:[%s3709_s3 + $0x228] sm:$0xff]  ;;  %v2010_v44 = vld [vmem:[%s3709_s3 + $0x560] sm:$0xff] }
 0x14e   :  { %2261 = vmatpush1.bf16.msra.mxu1 %v2260_v52  ;;  %2207 = vmatprep.subr.bf16.mxu0 %v2206_v5  ;;  %v2222_v52 = vpack.c.bf16 %v1186_v45, %v1184_v43 }
 0x14f   :  { %2263 = vmatprep.subr.bf16.mxu1 %v2262_v33 }
 0x151   :  { %2209 = vmatpush1.bf16.msra.mxu0 %v2208_v60 }
 0x152   :  { %2265 = vmatpush1.bf16.msra.mxu1 %v2264_v23  ;;  %2211 = vmatprep.subr.bf16.mxu0 %v2210_v53  ;;  %v2280_v53 = vpack.c.bf16 %v1995_v57, %v1993_v17  ;;  %v2012_v57 = vld [vmem:[%s3709_s3 + $0x578] sm:$0xff] }
 0x153   :  { %2267 = vmatprep.subr.bf16.mxu1 %v2266_v13  ;;  %v1189_v13 = vld [vmem:[%s3709_s3 + $0x258] sm:$0xff] }
 0x154   :  { %v2228_v54 = vpack.c.bf16 %v1189_v13, %v1187_v26 }
 0x155   :  { %2213 = vmatpush1.bf16.msra.mxu0 %v2212_v49  ;;  %v2226_v49 = vpack.c.bf16 %v1190_v55, %v1188_v58  ;;  %v2014_v58 = vld [vmem:[%s3709_s3 + $0x590] sm:$0xff] }
 0x156   :  { %2269 = vmatpush1.bf16.msra.mxu1 %v2268_v0  ;;  %2215 = vmatprep.subr.bf16.mxu0 %v2214_v56 }
 0x157   :  { %2271 = vmatprep.subr.bf16.mxu1 %v2270_v14  ;;  %v1191_v14 = vld [vmem:[%s3709_s3 + $0x270] sm:$0xff] }
 0x158   :  { %v2232_v30 = vpack.c.bf16 %v1193_v40, %v1191_v14  ;;  %v2021_v40 = vld [vmem:[%s3709_s3 + $0x5e8] sm:$0xff] }
 0x159   :  { %2217 = vmatpush1.bf16.msra.mxu0 %v2216_v22  ;;  %v1997_v22 = vld [vmem:[%s3709_s3 + $0x4e0] sm:$0xff] }
 0x15a   :  { %2273 = vmatpush1.bf16.msra.mxu1 %v2272_v19  ;;  %2219 = vmatprep.subr.bf16.mxu0 %v2218_v16  ;;  %v2003_v16 = vld [vmem:[%s3709_s3 + $0x528] sm:$0xff] }
 0x15b   :  { %2275 = vmatprep.subr.bf16.mxu1 %v2274_v4  ;;  %v2288_v12 = vpack.c.bf16 %v2003_v16, %v2001_v20  ;;  %v2025_v20 = vld [vmem:[%s3709_s3 + $0x618] sm:$0xff] }
 0x15c   :  { %v2028_v16 = vld [vmem:[%s3709_s3 + $0x638] sm:$0xff] }
 0x15d   :  { %2221 = vmatpush1.bf16.msra.mxu0 %v2220_v39  ;;  %v2008_v39 = vld [vmem:[%s3709_s3 + $0x548] sm:$0xff] }
 0x15e   :  { %2223 = vmatprep.subr.bf16.mxu0 %v2222_v52  ;;  %v2290_v4 = vpack.c.bf16 %v2010_v44, %v2008_v39  ;;  %v2030_v39 = vld [vmem:[%s3709_s3 + $0x650] sm:$0xff] }
 0x15f   :  { %v2310_v44 = vpack.c.bf16 %v2030_v39, %v2028_v16 }
 0x19a   :  { %v2411_v24 = vpop.permute.xlu1 %2410  ;;  %v1099_v10 = vpop.permute.xlu0 %1098 }
 0x19b   :  { %v3194_v38 = vmax.f32 %v2854_v8, %v1099_v10  ;;  %v2276_v8 = vpack.c.bf16 %v1991_v59, %v1989_v46  ;;  %v2413_v18 = vunpack.i.h.bf16 %v2411_v24  ;;  %v2412_v50 = vunpack.i.l.bf16 %v2411_v24 }
 0x19d   :  { %1119 = vrot.lane.b32.xlu1 %v3194_v38, %s2474_s2  ;;  %2277 = vmatpush1.bf16.msra.mxu1 %v2276_v8  ;;  %v849_v2 = vmax.f32 %v2843_v62, %v2413_v18  ;;  %v844_v62 = vmax.f32 %v2840_v51, %v2412_v50  ;;  %v2002_v51 = vld [vmem:[%s3709_s3 + $0x518] sm:$0xff]  ;;  %v2011_v50 = vld [vmem:[%s3709_s3 + $0x570] sm:$0xff] }
 0x19e   :  { %2279 = vmatprep.subr.bf16.mxu1 %v2278_v47  ;;  %v2286_v36 = vpack.c.bf16 %v2004_v41, %v2002_v51  ;;  %v2024_v51 = vld [vmem:[%s3709_s3 + $0x608] sm:$0xff]  ;;  %v2026_v41 = vld [vmem:[%s3709_s3 + $0x620] sm:$0xff] }
 0x19f   :  { %v1104_v21 = vpop.permute.xlu1 %1103 }
 0x1a0   :  { %v1106_v48 = vmax.f32 %v2874_v42, %v1104_v21  ;;  %v1183_v42 = vld [vmem:[%s3709_s3 + $0x210] sm:$0xff] }
 0x1a1   :  { %v2224_v5 = vpack.c.bf16 %v1185_v61, %v1183_v42  ;;  %2281 = vmatpush1.bf16.msra.mxu1 %v2280_v53 }
 0x1a2   :  { %1123 = vrot.lane.b32.xlu1 %v1106_v48, %s2475_s23 }
 0x1a3   :  { %2225 = vmatpush1.bf16.msra.mxu0 %v2224_v5 }
 0x1a4   :  { %v2416_v33 = vpop.permute.xlu0 %2415  ;;  %2227 = vmatprep.subr.bf16.mxu0 %v2226_v49 }
 0x1a5   :  { %v2418_v11 = vunpack.i.h.bf16 %v2416_v33  ;;  %v2417_v23 = vunpack.i.l.bf16 %v2416_v33  ;;  %v2007_v33 = vld [vmem:[%s3709_s3 + $0x540] sm:$0xff] }
 0x1a6   :  { %v857_v10 = vpop.permute.xlu1 %856 }
 0x1a7   :  { %v1096_v60 = vmax.f32 %v2902_v31, %v2418_v11  ;;  %v1998_v31 = vld [vmem:[%s3709_s3 + $0x4e8] sm:$0xff]  ;;  %v1091_v6 = vmax.f32 %v2899_v27, %v2417_v23  ;;  %2229 = vmatpush1.bf16.msra.mxu0 %v2228_v54  ;;  %v2284_v27 = vpack.c.bf16 %v1999_v25, %v1997_v22  ;;  %v859_v21 = vmax.f32 %v2919_v9, %v857_v10  ;;  %v2009_v11 = vld [vmem:[%s3709_s3 + $0x558] sm:$0xff]  ;;  %v2015_v25 = vld [vmem:[%s3709_s3 + $0x5a0] sm:$0xff] }
 0x1a8   :  { %v2282_v0 = vpack.c.bf16 %v2000_v15, %v1998_v31  ;;  %v2292_v49 = vpack.c.bf16 %v2009_v11, %v2007_v33  ;;  %v2294_v15 = vpack.c.bf16 %v2014_v58, %v2012_v57  ;;  %v2032_v10 = vld [vmem:[%s3709_s3 + $0x668] sm:$0xff]  ;;  %v2039_v33 = vld [vmem:[%s3709_s3 + $0x6c0] sm:$0xff]  ;;  %v2041_v11 = vld [vmem:[%s3709_s3 + $0x6d8] sm:$0xff] }
 0x1a9   :  { %1115 = vrot.lane.b32.xlu1 %v1096_v60, %s2476_s0  ;;  %v852_v1 = vpop.permute.xlu0 %851  ;;  %v2419_v19 = vpack.i.bf16 %v844_v62, %v1091_v6  ;;  %v2424_v24 = vpack.i.bf16 %v849_v2, %v1096_v60  ;;  %v2324_v57 = vpack.c.bf16 %v2041_v11, %v2039_v33 }
 0x1aa   :  { %v854_v56 = vmax.f32 %v2931_v63, %v852_v1  ;;  %2283 = vmatprep.subr.bf16.mxu1 %v2282_v0  ;;  %v1194_v63 = vld [vmem:[%s3709_s3 + $0x290] sm:$0xff]  ;;  %v2013_v0 = vld [vmem:[%s3709_s3 + $0x588] sm:$0xff] }
 0x1ab   :  { %v2230_v34 = vpack.c.bf16 %v1194_v63, %v1192_v37  ;;  %2285 = vmatpush1.bf16.msra.mxu1 %v2284_v27  ;;  %v2017_v37 = vld [vmem:[%s3709_s3 + $0x5b8] sm:$0xff]  ;;  %v2022_v27 = vld [vmem:[%s3709_s3 + $0x5f0] sm:$0xff] }
 0x1ac   :  { %872 = vrot.lane.b32.xlu0 %v854_v56, %s2474_s2  ;;  %2287 = vmatprep.subr.bf16.mxu1 %v2286_v36  ;;  %v2300_v63 = vpack.c.bf16 %v2017_v37, %v2015_v25  ;;  %v2023_v36 = vld [vmem:[%s3709_s3 + $0x600] sm:$0xff] }
 0x1ad   :  { %868 = vrot.lane.b32.xlu1 %v849_v2, %s2476_s0  ;;  %2231 = vmatprep.subr.bf16.mxu0 %v2230_v34  ;;  %v2016_v2 = vld [vmem:[%s3709_s3 + $0x5a8] sm:$0xff]  ;;  %v2019_v34 = vld [vmem:[%s3709_s3 + $0x5d0] sm:$0xff]  ;;  %v2058_v25 = vld [vmem:[%s3709_s3 + $0x7a0] sm:$0xff] }
 0x1ae   :  { %2233 = vmatpush1.bf16.msra.mxu0 %v2232_v30  ;;  %v2306_v30 = vpack.c.bf16 %v2026_v41, %v2024_v51  ;;  %v2059_v41 = vld [vmem:[%s3709_s3 + $0x7b0] sm:$0xff] }
 0x1af   :  { %2289 = vmatpush1.bf16.msra.mxu1 %v2288_v12  ;;  %2291 = vmatprep.subr.bf16.mxu0 %v2290_v4  ;;  %v2308_v12 = vpack.c.bf16 %v2025_v20, %v2023_v36  ;;  %v2027_v4 = vld [vmem:[%s3709_s3 + $0x630] sm:$0xff] }
 0x1b0   :  { %2420 = vrot.lane.b32.xlu0 %v2419_v19, %s2474_s2  ;;  %v2304_v19 = vpack.c.bf16 %v2021_v40, %v2019_v34  ;;  %v2062_v34 = vld [vmem:[%s3709_s3 + $0x7d0] sm:$0xff] }
 0x1b4   :  { %2425 = vrot.lane.b32.xlu0 %v2424_v24, %s2475_s23  ;;  %v2029_v24 = vld [vmem:[%s3709_s3 + $0x648] sm:$0xff] }
 0x1b8   :  { %876 = vrot.lane.b32.xlu0 %v859_v21, %s2475_s23  ;;  %v2034_v21 = vld [vmem:[%s3709_s3 + $0x680] sm:$0xff] }
 0x20f   :  { %v1120_v48 = vpop.permute.xlu1 %1119 }
 0x210   :  { %v1129_v61 = vsel %vm879_vm8, %v3194_v38, %v1120_v48  ;;  %v2312_v48 = vpack.c.bf16 %v2029_v24, %v2027_v4 }
 0x214   :  { %v1124_v59 = vpop.permute.xlu1 %1123 }
 0x215   :  { %v1130_v5 = vsel %vm881_vm9, %v1129_v61, %v1124_v59  ;;  %v2031_v59 = vld [vmem:[%s3709_s3 + $0x660] sm:$0xff] }
 0x216   :  { %v3313_v18 = vrot.slane %v1130_v5, 1  ;;  %v2037_v5 = vld [vmem:[%s3709_s3 + $0x6a8] sm:$0xff] }
 0x21b   :  { %v1116_v42 = vpop.permute.xlu1 %1115 }
 0x21e   :  { %v873_v46 = vpop.permute.xlu0 %872 }
 0x21f   :  { %v885_v60 = vsel %vm879_vm8, %v854_v56, %v873_v46  ;;  %v869_v55 = vpop.permute.xlu1 %868  ;;  %v2296_v56 = vpack.c.bf16 %v2013_v0, %v2011_v50  ;;  %v2314_v46 = vpack.c.bf16 %v2034_v21, %v2032_v10  ;;  %v2054_v50 = vld [vmem:[%s3709_s3 + $0x770] sm:$0xff] }
 0x222   :  { %v2421_v43 = vpop.permute.xlu0 %2420 }
 0x223   :  { %v2423_v8 = vunpack.i.h.bf16 %v2421_v43  ;;  %v2422_v45 = vunpack.i.l.bf16 %v2421_v43  ;;  %v2033_v43 = vld [vmem:[%s3709_s3 + $0x678] sm:$0xff] }
 0x225   :  { %v880_v32 = vsel %vm879_vm8, %v844_v62, %v2423_v8  ;;  %v1126_v47 = vsel %vm879_vm8, %v1091_v6, %v2422_v45  ;;  %v2018_v6 = vld [vmem:[%s3709_s3 + $0x5c0] sm:$0xff]  ;;  %v2020_v62 = vld [vmem:[%s3709_s3 + $0x5d8] sm:$0xff]  ;;  %v2038_v45 = vld [vmem:[%s3709_s3 + $0x6b0] sm:$0xff] }
 0x226   :  { %v2426_v52 = vpop.permute.xlu0 %2425  ;;  %v2298_v22 = vpack.c.bf16 %v2018_v6, %v2016_v2  ;;  %v2302_v14 = vpack.c.bf16 %v2022_v27, %v2020_v62  ;;  %v2036_v8 = vld [vmem:[%s3709_s3 + $0x698] sm:$0xff]  ;;  %v2051_v6 = vld [vmem:[%s3709_s3 + $0x750] sm:$0xff]  ;;  %v2055_v27 = vld [vmem:[%s3709_s3 + $0x780] sm:$0xff] }
 0x227   :  { %v2428_v28 = vunpack.i.h.bf16 %v2426_v52  ;;  %v2427_v9 = vunpack.i.l.bf16 %v2426_v52  ;;  %v2318_v61 = vpack.c.bf16 %v2038_v45, %v2036_v8  ;;  %v2035_v52 = vld [vmem:[%s3709_s3 + $0x690] sm:$0xff] }
 0x229   :  { %v882_v38 = vsel %vm881_vm9, %v880_v32, %v2428_v28  ;;  %v1127_v17 = vsel %vm881_vm9, %v1126_v47, %v2427_v9  ;;  %v2040_v28 = vld [vmem:[%s3709_s3 + $0x6c8] sm:$0xff]  ;;  %v2042_v9 = vld [vmem:[%s3709_s3 + $0x6e0] sm:$0xff]  ;;  %v2320_v32 = vpack.c.bf16 %v2037_v5, %v2035_v52 }
 0x22a   :  { %v1128_v23 = vsel %vm883_vm10, %v1127_v17, %v1116_v42  ;;  %v877_v53 = vpop.permute.xlu0 %876  ;;  %v884_v31 = vsel %vm883_vm10, %v882_v38, %v869_v55  ;;  %v2316_v42 = vpack.c.bf16 %v2033_v43, %v2031_v59  ;;  %v2322_v47 = vpack.c.bf16 %v2042_v9, %v2040_v28  ;;  %v2044_v38 = vld [vmem:[%s3709_s3 + $0x6f8] sm:$0xff]  ;;  %v2046_v17 = vld [vmem:[%s3709_s3 + $0x710] sm:$0xff]  ;;  %v2050_v55 = vld [vmem:[%s3709_s3 + $0x740] sm:$0xff] }
 0x22b   :  { %v3317_v26 = vrot.slane %v1128_v23, 1  ;;  %v886_v13 = vsel %vm881_vm9, %v885_v60, %v877_v53  ;;  %v2326_v58 = vpack.c.bf16 %v2046_v17, %v2044_v38  ;;  %v2043_v60 = vld [vmem:[%s3709_s3 + $0x6f0] sm:$0xff]  ;;  %v2045_v23 = vld [vmem:[%s3709_s3 + $0x708] sm:$0xff] }
 0x22c   :  { %v1138_v54 = vsel %vm620_vm1, %v886_v13, %v3313_v18  ;;  %v2048_v53 = vld [vmem:[%s3709_s3 + $0x728] sm:$0xff]  ;;  %v2328_v13 = vpack.c.bf16 %v2045_v23, %v2043_v60 }
 0x22d   :  { %1947 = vmatprep.mubr.msk.f32.mxu0 %vm883_vm10, %v1138_v54  ;;  %2005 = vmatprep.mubr.msk.f32.mxu1 %vm883_vm10, %v1138_v54  ;;  %v3333_v1 = vsel %vm620_vm1, %v884_v31, %v3317_v26  ;;  %v2049_v31 = vld [vmem:[%s3709_s3 + $0x738] sm:$0xff] }
 0x22e   :  { %1265 = vmatmul.mubr.f32.vlgmr.msra.gmra.mrb[24].mxu0 %v3333_v1  ;;  %1399 = vmatmul.mubr.f32.vlgmr.msra.gmra.mrb[24].mxu1 %v3333_v1 }
 0x22f   :  { %2293 = vmatpush1.bf16.msra.mxu0 %v2292_v49  ;;  %1948 = vmatprep.mubr.msk.f32.mxu0 %vm883_vm10, %v3313_v18  ;;  %v2330_v49 = vpack.c.bf16 %v2050_v55, %v2048_v53 }
 0x230   :  { %2006 = vmatprep.mubr.msk.f32.mxu1 %vm883_vm10, %v3313_v18  ;;  %2295 = vmatprep.subr.bf16.mxu0 %v2294_v15  ;;  %v2052_v15 = vld [vmem:[%s3709_s3 + $0x758] sm:$0xff] }
 0x231   :  { %v2334_v2 = vpack.c.bf16 %v2054_v50, %v2052_v15 }
 0x232   :  { %1271 = vmatmul.mubr.f32.gmra.mrb[26].mxu0 %v3317_v26  ;;  %1405 = vmatmul.mubr.f32.gmra.mrb[26].mxu1 %v3317_v26 }
 0x233   :  { %2297 = vmatpush1.bf16.msra.mxu0 %v2296_v56  ;;  %2063 = vmatprep.mubr.msk.f32.mxu0 %vm883_vm10, %v1138_v54  ;;  %v2047_v54 = vld [vmem:[%s3709_s3 + $0x720] sm:$0xff]  ;;  %v2053_v56 = vld [vmem:[%s3709_s3 + $0x768] sm:$0xff] }
 0x234   :  { %2299 = vmatprep.subr.bf16.mxu0 %v2298_v22  ;;  %v2332_v0 = vpack.c.bf16 %v2049_v31, %v2047_v54  ;;  %v2056_v22 = vld [vmem:[%s3709_s3 + $0x788] sm:$0xff]  ;;  %v2336_v37 = vpack.c.bf16 %v2053_v56, %v2051_v6 }
 0x235   :  { %v2338_v62 = vpack.c.bf16 %v2058_v25, %v2056_v22 }
 0x237   :  { %2301 = vmatpush1.bf16.msra.mxu0 %v2300_v63  ;;  %v2057_v63 = vld [vmem:[%s3709_s3 + $0x798] sm:$0xff] }
 0x238   :  { %2303 = vmatprep.subr.bf16.mxu0 %v2302_v14  ;;  %v2060_v14 = vld [vmem:[%s3709_s3 + $0x7b8] sm:$0xff]  ;;  %v2340_v40 = vpack.c.bf16 %v2057_v63, %v2055_v27 }
 0x239   :  { %v2342_v51 = vpack.c.bf16 %v2062_v34, %v2060_v14  ;;  %v1703_v34 = vld [vmem:[%s3711_s5 + $0x80] sm:$0xff] }
 0x23b   :  { %2305 = vmatpush1.bf16.msra.mxu0 %v2304_v19  ;;  %v2061_v19 = vld [vmem:[%s3709_s3 + $0x7c8] sm:$0xff] }
 0x23c   :  { %2307 = vmatprep.subr.bf16.mxu0 %v2306_v30  ;;  %v2344_v30 = vpack.c.bf16 %v2061_v19, %v2059_v41 }
 0x23f   :  { %2309 = vmatpush1.bf16.msra.mxu0 %v2308_v12 }
 0x240   :  { %2311 = vmatprep.subr.bf16.mxu0 %v2310_v44 }
 0x243   :  { %2313 = vmatpush1.bf16.msra.mxu0 %v2312_v48 }
 0x244   :  { %2315 = vmatprep.subr.bf16.mxu0 %v2314_v46 }
 0x247   :  { %2317 = vmatpush1.bf16.msra.mxu0 %v2316_v42 }
 0x248   :  { %2319 = vmatprep.subr.bf16.mxu0 %v2318_v61 }
 0x24b   :  { %2321 = vmatpush1.bf16.msra.mxu0 %v2320_v32 }
 0x24c   :  { %2323 = vmatprep.subr.bf16.mxu0 %v2322_v47 }
 0x24f   :  { %2325 = vmatpush1.bf16.msra.mxu0 %v2324_v57 }
 0x250   :  { %2327 = vmatprep.subr.bf16.mxu0 %v2326_v58 }
 0x253   :  { %2329 = vmatpush1.bf16.msra.mxu0 %v2328_v13 }
 0x254   :  { %2331 = vmatprep.subr.bf16.mxu0 %v2330_v49 }
 0x257   :  { %2333 = vmatpush1.bf16.msra.mxu0 %v2332_v0 }
 0x258   :  { %2335 = vmatprep.subr.bf16.mxu0 %v2334_v2 }
 0x25b   :  { %2337 = vmatpush1.bf16.msra.mxu0 %v2336_v37 }
 0x25c   :  { %2339 = vmatprep.subr.bf16.mxu0 %v2338_v62 }
 0x25f   :  { %2341 = vmatpush1.bf16.msra.mxu0 %v2340_v40  ;;  %v1704_v40 = vld [vmem:[%s3711_s5 + $0x88] sm:$0xff] }
 0x260   :  { %2343 = vmatprep.subr.bf16.mxu0 %v2342_v51  ;;  %v1687_v51 = vld [vmem:[%s3711_s5] sm:$0xff]  ;;  %v2346_v19 = vpack.c.bf16 %v1704_v40, %v1703_v34  ;;  %v2477_v40 = vmov 0.0|0.0  }
 0x262   :  { %2347 = vmatprep.subr.bf16.mxu1 %v2346_v19 }
 0x263   :  { %2345 = vmatpush1.bf16.msra.mxu0 %v2344_v30  ;;  %v1688_v30 = vld [vmem:[%s3711_s5 + $0x8] sm:$0xff] }
 0x266   :  { %1533 = vmatmul.mubr.f32.vlgmr.msra.gmra.mrb[28].mxu0 %v3333_v1 }
 0x267   :  { %2064 = vmatprep.mubr.msk.f32.mxu0 %vm883_vm10, %v3313_v18 }
 0x26a   :  { %1539 = vmatmul.mubr.f32.gmra.mrb[30].mxu0 %v3317_v26  ;;  %v611_v26 = vld [vmem:[%s3710_s4] sm:$0x7] }
 0x26b   :  { %v1569_v28 = vrot.slane %v611_v26, %v693_v35  ;;  %v1565_v32 = vrot.slane %v611_v26, %v689_v29  ;;  %v1694_v26 = vld [vmem:[%s3711_s5 + $0x38] sm:$0xff] }
 0x301   :  { %v1266_v36 = vpop.f32.mrb[24].mxu0  ;;  %v1400_v20 = vpop.f32.mrb[24].mxu1 }
 0x302   :  { %v1547_v16 = vrot.slane %v1400_v20, 1  ;;  %v1268_v39 = vpop.f32.mrb[25].mxu0  ;;  %v1402_v12 = vpop.f32.mrb[25].mxu1  ;;  %v1706_v20 = vld [vmem:[%s3711_s5 + $0x98] sm:$0xff] }
 0x303   :  { %v1548_v44 = vrot.slane %v1402_v12, 1  ;;  %v1689_v12 = vld [vmem:[%s3711_s5 + $0x10] sm:$0xff] }
 0x304   :  { %v1551_v4 = vadd.f32 %v1547_v16, %v1266_v36  ;;  %v2348_v16 = vpack.c.bf16 %v1688_v30, %v1687_v51 }
 0x305   :  { %v1552_v24 = vadd.f32 %v1548_v44, %v1268_v39  ;;  %v1272_v10 = vpop.f32.mrb[26].mxu0  ;;  %v1406_v21 = vpop.f32.mrb[26].mxu1  ;;  %v1690_v44 = vld [vmem:[%s3711_s5 + $0x18] sm:$0xff] }
 0x306   :  { %v1609_v48 = vrot.slane %v1406_v21, 1  ;;  %v1274_v46 = vpop.f32.mrb[27].mxu0  ;;  %v1408_v59 = vpop.f32.mrb[27].mxu1  ;;  %2349 = vmatpush3.bf16.msra.mxu1 %v2348_v16  ;;  %v2352_v21 = vpack.c.bf16 %v1690_v44, %v1689_v12 }
 0x307   :  { %v1610_v43 = vrot.slane %v1408_v59, 1  ;;  %v1692_v59 = vld [vmem:[%s3711_s5 + $0x28] sm:$0xff] }
 0x308   :  { %v1613_v1 = vadd.f32 %v1609_v48, %v1266_v36  ;;  %v1615_v8 = vadd.f32 %v1609_v48, %v1272_v10  ;;  %v1705_v36 = vld [vmem:[%s3711_s5 + $0x90] sm:$0xff]  ;;  %v1708_v10 = vld [vmem:[%s3711_s5 + $0xa8] sm:$0xff] }
 0x309   :  { %v1614_v45 = vadd.f32 %v1610_v43, %v1268_v39  ;;  %v1616_v18 = vadd.f32 %v1610_v43, %v1274_v46  ;;  %v2350_v39 = vpack.c.bf16 %v1706_v20, %v1705_v36  ;;  %v1691_v46 = vld [vmem:[%s3711_s5 + $0x20] sm:$0xff]  ;;  %v1709_v43 = vld [vmem:[%s3711_s5 + $0xb0] sm:$0xff] }
 0x30b   :  { %2351 = vmatprep.subr.bf16.mxu1 %v2350_v39 }
 0x30c   :  { %2353 = vmatpush3.bf16.msra.mxu1 %v2352_v21 }
 0x339   :  { %v1534_v42 = vpop.f32.mrb[28].mxu0 }
 0x33a   :  { %v1555_v61 = vrot.slane %v1534_v42, 2  ;;  %v1536_v52 = vpop.f32.mrb[29].mxu0  ;;  %v1711_v42 = vld [vmem:[%s3711_s5 + $0xc0] sm:$0xff] }
 0x33b   :  { %v1556_v5 = vrot.slane %v1536_v52, 2 }
 0x33c   :  { %v1559_v9 = vadd.f32 %v1555_v61, %v1551_v4  ;;  %v1707_v4 = vld [vmem:[%s3711_s5 + $0xa0] sm:$0xff]  ;;  %v1712_v61 = vld [vmem:[%s3711_s5 + $0xc8] sm:$0xff] }
 0x33d   :  { %v1560_v47 = vadd.f32 %v1556_v5, %v1552_v24  ;;  %v1540_v33 = vpop.f32.mrb[30].mxu0  ;;  %v2354_v48 = vpack.c.bf16 %v1708_v10, %v1707_v4  ;;  %v2362_v5 = vpack.c.bf16 %v1712_v61, %v1711_v42  ;;  %v1800_v42 = vld [vmem:[%s3713_s7 + $0x18] sm:$0xff] }
 0x33e   :  { %v1619_v11 = vrot.slane %v1540_v33, 2  ;;  %v1542_v38 = vpop.f32.mrb[31].mxu0  ;;  %v1572_v23 = vadd.f32 %v1565_v32, %v1559_v9  ;;  %v1696_v9 = vld [vmem:[%s3711_s5 + $0x48] sm:$0xff] }
 0x33f   :  { %v1573_v17 = vadd.f32 %v1569_v28, %v1560_v47  ;;  %v1620_v57 = vrot.slane %v1542_v38, 2  ;;  %2355 = vmatprep.subr.bf16.mxu1 %v2354_v48  ;;  %v1714_v47 = vld [vmem:[%s3711_s5 + $0xd8] sm:$0xff]  ;;  %v1697_v38 = vld [vmem:[%s3711_s5 + $0x50] sm:$0xff] }
 0x340   :  { %v1623_v58 = vadd.f32 %v1619_v11, %v1613_v1  ;;  %v1625_v60 = vadd.f32 %v1619_v11, %v1615_v8  ;;  %v1574_v50 = vmax.f32 %v1572_v23, 0.0  ;;  %v1710_v1 = vld [vmem:[%s3711_s5 + $0xb8] sm:$0xff]  ;;  %v2356_v8 = vpack.c.bf16 %v1692_v59, %v1691_v46  ;;  %v1716_v23 = vld [vmem:[%s3711_s5 + $0xe8] sm:$0xff]  ;;  %v1797_v46 = vld [vmem:[%s3713_s7] sm:$0xff] }
 0x341   :  { %v1575_v53 = vmax.f32 %v1573_v17, 0.0  ;;  %v1624_v55 = vadd.f32 %v1620_v57, %v1614_v45  ;;  %v1626_v13 = vadd.f32 %v1620_v57, %v1616_v18  ;;  %v2358_v45 = vpack.c.bf16 %v1710_v1, %v1709_v43  ;;  %v1693_v18 = vld [vmem:[%s3711_s5 + $0x30] sm:$0xff]  ;;  %v1698_v17 = vld [vmem:[%s3711_s5 + $0x58] sm:$0xff] }
 0x342   :  { %v1627_v49 = vadd.f32 %v1623_v58, %v1565_v32  ;;  %v1629_v54 = vadd.f32 %v1625_v60, %v1565_v32  ;;  %v1578_v25 = vrot.slane %v1574_v50, 1  ;;  %2357 = vmatpush3.bf16.msra.mxu1 %v2356_v8  ;;  %v2360_v52 = vpack.c.bf16 %v1694_v26, %v1693_v18  ;;  %v1713_v32 = vld [vmem:[%s3711_s5 + $0xd0] sm:$0xff]  ;;  %v1715_v60 = vld [vmem:[%s3711_s5 + $0xe0] sm:$0xff] }
 0x343   :  { %v1628_v31 = vadd.f32 %v1624_v55, %v1569_v28  ;;  %v1630_v35 = vadd.f32 %v1626_v13, %v1569_v28  ;;  %v1579_v3 = vrot.slane %v1575_v53, 1  ;;  %2359 = vmatprep.subr.bf16.mxu1 %v2358_v45  ;;  %v1695_v28 = vld [vmem:[%s3711_s5 + $0x40] sm:$0xff]  ;;  %v2366_v11 = vpack.c.bf16 %v1714_v47, %v1713_v32  ;;  %v1799_v26 = vld [vmem:[%s3713_s7 + $0x10] sm:$0xff]  ;;  %v1804_v47 = vld [vmem:[%s3713_s7 + $0x38] sm:$0xff] }
 0x344   :  { %v1633_v15 = vmax.f32 %v1629_v54, 0.0  ;;  %v1631_v0 = vmax.f32 %v1627_v49, 0.0  ;;  %v3523_v41 = vmax.f32 %v1574_v50, %v1578_v25  ;;  %v2364_v33 = vpack.c.bf16 %v1696_v9, %v1695_v28  ;;  %v1700_v54 = vld [vmem:[%s3711_s5 + $0x68] sm:$0xff]  ;;  %v1803_v32 = vld [vmem:[%s3713_s7 + $0x30] sm:$0xff] }
 0x345   :  { %v1634_v29 = vmax.f32 %v1630_v35, 0.0  ;;  %v1632_v6 = vmax.f32 %v1628_v31, 0.0  ;;  %v3503_v62 = vmax.f32 %v1575_v53, %v1579_v3  ;;  %v2368_v57 = vpack.c.bf16 %v1698_v17, %v1697_v38  ;;  %v1699_v53 = vld [vmem:[%s3711_s5 + $0x60] sm:$0xff]  ;;  %v1717_v3 = vld [vmem:[%s3711_s5 + $0xf0] sm:$0xff]  ;;  %v1802_v28 = vld [vmem:[%s3713_s7 + $0x28] sm:$0xff] }
 0x346   :  { %v1637_v2 = vrot.slane %v1633_v15, 1  ;;  %2361 = vmatpush3.bf16.msra.mxu1 %v2360_v52  ;;  %v2370_v49 = vpack.c.bf16 %v1716_v23, %v1715_v60  ;;  %v2372_v35 = vpack.c.bf16 %v1700_v54, %v1699_v53  ;;  %v2382_v52 = vpack.c.bf16 %v1800_v42, %v1799_v26  ;;  %v1806_v38 = vld [vmem:[%s3713_s7 + $0x48] sm:$0xff]  ;;  %v1809_v23 = vld [vmem:[%s3713_s7 + $0x60] sm:$0xff] }
 0x347   :  { %v1638_v56 = vrot.slane %v1634_v29, 1  ;;  %2363 = vmatprep.subr.bf16.mxu1 %v2362_v5  ;;  %v1801_v5 = vld [vmem:[%s3713_s7 + $0x20] sm:$0xff]  ;;  %v1810_v53 = vld [vmem:[%s3713_s7 + $0x68] sm:$0xff] }
 0x348   :  { %v3499_v22 = vmax.f32 %v1631_v0, %v1637_v2  ;;  %v3511_v14 = vmax.f32 %v1633_v15, %v1637_v2  ;;  %v1701_v0 = vld [vmem:[%s3711_s5 + $0x70] sm:$0xff]  ;;  %v2385_v9 = vpack.c.bf16 %v1802_v28, %v1801_v5 }
 0x349   :  { %v3501_v37 = vmax.f32 %v1632_v6, %v1638_v56  ;;  %v3505_v27 = vmax.f32 %v1634_v29, %v1638_v56  ;;  %v1718_v29 = vld [vmem:[%s3711_s5 + $0xf8] sm:$0xff] }
 0x34a   :  { %v2434_v24 = vpack.i.bf16 %v3523_v41, %v3511_v14  ;;  %2365 = vmatpush3.bf16.msra.mxu1 %v2364_v33  ;;  %v2374_v2 = vpack.c.bf16 %v1718_v29, %v1717_v3  ;;  %v1702_v6 = vld [vmem:[%s3711_s5 + $0x78] sm:$0xff]  ;;  %v2388_v33 = vpack.c.bf16 %v1804_v47, %v1803_v32 }
 0x34b   :  { %1651 = vrot.lane.b32.xlu1 %v3501_v37, %s2475_s23  ;;  %v2429_v63 = vpack.i.bf16 %v3503_v62, %v3505_v27  ;;  %2367 = vmatprep.subr.bf16.mxu1 %v2366_v11  ;;  %v1805_v11 = vld [vmem:[%s3713_s7 + $0x40] sm:$0xff] }
 0x34c   :  { %v2391_v17 = vpack.c.bf16 %v1806_v38, %v1805_v11 }
 0x34d   :  { %2430 = vrot.lane.b32.xlu0 %v2429_v63, %s2475_s23 }
 0x34e   :  { %2369 = vmatpush3.bf16.msra.mxu1 %v2368_v57  ;;  %v1807_v57 = vld [vmem:[%s3713_s7 + $0x50] sm:$0xff] }
 0x34f   :  { %2371 = vmatprep.subr.bf16.mxu1 %v2370_v49  ;;  %v1812_v49 = vld [vmem:[%s3713_s7 + $0x78] sm:$0xff] }
 0x351   :  { %2435 = vrot.lane.b32.xlu0 %v2434_v24, %s2475_s23 }
 0x352   :  { %2373 = vmatpush3.bf16.msra.mxu1 %v2372_v35  ;;  %v2065_v35 = vld [vmem:[%s3712_s6] ss:$0 sm:$0xff] }
 0x353   :  { %2375 = vmatprep.subr.bf16.mxu1 %v2374_v2 }
 0x3bd   :  { %v1652_v31 = vpop.permute.xlu1 %1651 }
 0x3be   :  { %v1654_v56 = vmax.f32 %v3501_v37, %v1652_v31 }
 0x3bf   :  { %v2431_v58 = vpop.permute.xlu0 %2430 }
 0x3c0   :  { %v2433_v55 = vunpack.i.h.bf16 %v2431_v58  ;;  %v2432_v13 = vunpack.i.l.bf16 %v2431_v58  ;;  %v1808_v58 = vld [vmem:[%s3713_s7 + $0x58] sm:$0xff] }
 0x3c1   :  { %v2394_v60 = vpack.c.bf16 %v1808_v58, %v1807_v57 }
 0x3c2   :  { %v1593_v15 = vmax.f32 %v3503_v62, %v2433_v55  ;;  %v1664_v50 = vmax.f32 %v3505_v27, %v2432_v13  ;;  %v2376_v27 = vpack.c.bf16 %v1702_v6, %v1701_v0  ;;  %v1811_v55 = vld [vmem:[%s3713_s7 + $0x70] sm:$0xff]  ;;  %v2397_v13 = vpack.c.bf16 %v1810_v53, %v1809_v23  ;;  %v2066_v0 = vld [vmem:[%s3714_s8] ss:$0 sm:$0xff] }
 0x3c3   :  { %v2436_v51 = vpop.permute.xlu0 %2435  ;;  %v2400_v54 = vpack.c.bf16 %v1812_v49, %v1811_v55 }
 0x3c4   :  { %v1601_v25 = vrot.slane %v1593_v15, 2  ;;  %v1673_v62 = vrot.slane %v1664_v50, 2  ;;  %2377 = vmatpush3.bf16.msra.mxu1 %v2376_v27  ;;  %v2437_v19 = vunpack.i.l.bf16 %v2436_v51  ;;  %v2438_v37 = vunpack.i.h.bf16 %v2436_v51 }
 0x3c5   :  { %2378 = vmatprep.subr.bf16.mxu1 %v2477_v40 }
 0x3c6   :  { %v2439_v63 = vpack.i.bf16 %v1673_v62, %v3499_v22  ;;  %v2444_v34 = vpack.i.bf16 %v1601_v25, %v1654_v56  ;;  %v1659_v30 = vmax.f32 %v3511_v14, %v2437_v19  ;;  %v1588_v36 = vmax.f32 %v3523_v41, %v2438_v37  ;;  %v1798_v14 = vld [vmem:[%s3713_s7 + $0x8] sm:$0xff] }
 0x3c7   :  { %v2379_v18 = vpack.c.bf16 %v1798_v14, %v1797_v46 }
 0x3c8   :  { %2440 = vrot.lane.b32.xlu1 %v2439_v63, %s2475_s23  ;;  %2445 = vrot.lane.b32.xlu0 %v2444_v34, %s2475_s23  ;;  %v1670_v39 = vrot.slane %v1659_v30, 2  ;;  %v1599_v24 = vrot.slane %v1588_v36, 2 }
 0x3cc   :  { %1595 = vrot.lane.b32.xlu1 %v1593_v15, %s2475_s23 }
 0x43a   :  { %v2446_v20 = vpop.permute.xlu0 %2445  ;;  %v2441_v16 = vpop.permute.xlu1 %2440 }
 0x43b   :  { %v2448_v12 = vunpack.i.h.bf16 %v2446_v20  ;;  %v2443_v44 = vunpack.i.h.bf16 %v2441_v16  ;;  %v2442_v4 = vunpack.i.l.bf16 %v2441_v16  ;;  %v2447_v10 = vunpack.i.l.bf16 %v2446_v20 }
 0x43d   :  { %v1678_v21 = vsel %vm881_vm9, %v1670_v39, %v2443_v44  ;;  %v1649_v48 = vmax.f32 %v3499_v22, %v2442_v4  ;;  %v1606_v1 = vsel %vm881_vm9, %v1599_v24, %v2448_v12 }
 0x43e   :  { %v1596_v41 = vpop.permute.xlu1 %1595  ;;  %v1682_v59 = vrot.slane %v1678_v21, 6 }
 0x43f   :  { %v1677_v43 = vsel %vm881_vm9, %v1649_v48, %v2447_v10  ;;  %v1605_v22 = vsel %vm881_vm9, %v1588_v36, %v1596_v41 }
 0x440   :  { %v1681_v8 = vrot.slane %v1677_v43, 6  ;;  %v1686_v45 = vsel %vm811_vm3, %v1606_v1, %v1682_v59 }
 0x441   :  { %1790 = vmatprep.mubr.f32.mxu1 %v1686_v45 }
 0x442   :  { %v1685_v61 = vsel %vm811_vm3, %v1605_v22, %v1681_v8 }
 0x443   :  { %1791 = vmatmul.mubr.f32.vlgmr.msra.gmra.mrb[28].mxu1 %v1685_v61 }
 0x444   :  { %2380 = vmatpush3.bf16.msra.mxu1 %v2379_v18  ;;  %2151 = vmatprep.mubr.msk.f32.mxu1 %vm2478_vm11, %v2473_v7 }
 0x445   :  { %2381 = vmatprep.subr.bf16.mxu1 %v2477_v40 }
 0x448   :  { %2383 = vmatpush3.bf16.msra.mxu1 %v2382_v52 }
 0x449   :  { %2384 = vmatprep.subr.bf16.mxu1 %v2477_v40 }
 0x44c   :  { %2386 = vmatpush3.bf16.msra.mxu1 %v2385_v9 }
 0x44d   :  { %2387 = vmatprep.subr.bf16.mxu1 %v2477_v40 }
 0x450   :  { %2389 = vmatpush3.bf16.msra.mxu1 %v2388_v33 }
 0x451   :  { %2390 = vmatprep.subr.bf16.mxu1 %v2477_v40 }
 0x454   :  { %2392 = vmatpush3.bf16.msra.mxu1 %v2391_v17 }
 0x455   :  { %2393 = vmatprep.subr.bf16.mxu1 %v2477_v40 }
 0x458   :  { %2395 = vmatpush3.bf16.msra.mxu1 %v2394_v60 }
 0x459   :  { %2396 = vmatprep.subr.bf16.mxu1 %v2477_v40 }
 0x45c   :  { %2398 = vmatpush3.bf16.msra.mxu1 %v2397_v13 }
 0x45d   :  { %2399 = vmatprep.subr.bf16.mxu1 %v2477_v40 }
 0x460   :  { %2401 = vmatpush3.bf16.msra.mxu1 %v2400_v54 }
 0x516   :  { %v2099_v31 = vpop.f32.mrb[28].mxu1 }
 0x517   :  { %v2100_v15 = vpop.f32.mrb[29].mxu1 }
 0x518   :  { %v2101_v50 = vadd.f32 %v2100_v15, %v2099_v31 }
 0x51a   :  { %v1793_v3 = vadd.f32 %v2101_v50, %v2065_v35 }
 0x51c   :  { %v1796_v29 = vmax.f32 %v1793_v3, 0.0 }
 0x51e   :  { %2152 = vmatmul.mubr.f32.vlgmr.msra.gmra.mrb[30].mxu1 %v1796_v29 }
 0x5f1   :  { %v1886_v7 = vpop.f32.mrb[30].mxu1 }
 0x5f2   :  { %v1887_v2 = vadd.f32 %v2066_v0, %v1886_v7  ;;  %v2153_v6 = vpop.f32.mrb[31].mxu1 }
 0x5f4   :  { %v1890_v56 = vmax.f32 %v1887_v2, 0.0 }
 0x5f6   :  { %1892 = vst.msk [vmem:[#allocation2] sm:$0x3] %vm1891_vm12, %v1890_v56 }
 0x5f7   :  { %2460 = shalt.err (!%p2457_p4)
}
 0x5f8   :  { %s2461_s8 = scalar_lea.hbm %s3715_s9, 32 }
 0x5f9   :  { %p2462_p5 = scmp.ne.s32.totalorder %s3715_s9, %s2461_s8  ;;  %p2465_p6 = scmp.lt.u32.totalorder %s2461_s8, %s3715_s9 }
 0x5fb   :  { %p2467_p7 = pnand %p2465_p6, %p2462_p5 }
 0x5fd   :  { %2470 = shalt.err (!%p2467_p7)
}
 0x5fe   :  { %1902 = dma.vmem_to_hbm [thread:$0]  %s1900_s17, 32, %s3715_s9, [#allocation3]  }
 0x5ff   :  { %2471 = dma.done.wait [#allocation3], 32  }
 0x600   :  { %2472 = vsyncadd [#allocation3], 4294967264 }
 0x601   :  { %1906 = vsyncpa [#allocation3], 1 }

</bundles_post_ra>
